<compile_context>
chip_gen: v7x
topology: tpu7x:2x2x1
jax: 0.10.0
libtpu: 0.0.40
codegen_flags: <defaults>
</compile_context>

<pallas_src>
import jax
import jax.numpy as jnp
from jax import lax
from jax.experimental import pallas as pl
from jax.experimental.pallas import tpu as pltpu

# ----------------------- config -----------------------
VOCAB = 50
MAX_POS = 16
HIDDEN = 32
NUM_HEADS = 4
HEAD_DIM = HIDDEN // NUM_HEADS
NUM_LAYERS = 2
FFN = 64
OUT_DIM = 128          # matches nn.Linear(hidden_size, 128)
LN_EPS = 1e-12
MASK_BIAS = -1e9
ATTN_SCALE = 1.0 / (HEAD_DIM ** 0.5)


# ----------------------- fused Pallas kernel -----------------------
def _layernorm(x, ln):
    # ln: [2, H]  (row 0 = gamma, row 1 = beta)
    g = ln[0:1, :]
    b = ln[1:2, :]
    mean = jnp.mean(x, axis=-1, keepdims=True)
    var = jnp.mean(jnp.square(x - mean), axis=-1, keepdims=True)
    return (x - mean) * lax.rsqrt(var + LN_EPS) * g + b


def _encoder_kernel(x_ref, mask_ref, emb_ln_ref,
                    qkv_w_ref, qkv_b_ref, o_w_ref, o_b_ref, sa_ln_ref,
                    ffn1_w_ref, ffn1_b_ref, ffn2_w_ref, ffn2_b_ref, out_ln_ref,
                    fc_w_ref, fc_b_ref, out_ref):
    H, nH, Dh = HIDDEN, NUM_HEADS, HEAD_DIM

    # Embedding LayerNorm (word + positional add is done in the wrapper).
    h = _layernorm(x_ref[0], emb_ln_ref[...])                      # [S, H]

    # Key-side additive mask bias, computed in-kernel from the [1, S] mask
    # (no HBM-materialized per-head broadcast).
    bias = (1.0 - mask_ref[0]) * MASK_BIAS                         # [1, S]

    for l in range(NUM_LAYERS):                                    # static unroll
        # Fused Q/K/V projection with a concatenated [H, 3H] weight.
        qkv = jnp.dot(h, qkv_w_ref[l],
                      preferred_element_type=jnp.float32) + qkv_b_ref[l]   # [S, 3H]

        # All heads in this single grid step (static unrolled head loop).
        ctx_heads = []
        for hh in range(nH):
            qh = qkv[:, hh * Dh:(hh + 1) * Dh]                     # [S, Dh]
            kh = qkv[:, H + hh * Dh:H + (hh + 1) * Dh]             # [S, Dh]
            vh = qkv[:, 2 * H + hh * Dh:2 * H + (hh + 1) * Dh]     # [S, Dh]
            s = lax.dot_general(qh, kh, (((1,), (1,)), ((), ())),
                                preferred_element_type=jnp.float32)  # q @ k^T
            s = s * ATTN_SCALE + bias
            s = s - jnp.max(s, axis=-1, keepdims=True)
            p = jnp.exp(s)
            p = p * pl.reciprocal(jnp.sum(p, axis=-1, keepdims=True), approx=True)
            ctx_heads.append(jnp.dot(p, vh, preferred_element_type=jnp.float32))
        ctx = jnp.concatenate(ctx_heads, axis=-1)                  # [S, H]

        attn_out = jnp.dot(ctx, o_w_ref[l],
                           preferred_element_type=jnp.float32) + o_b_ref[l]
        h = _layernorm(h + attn_out, sa_ln_ref[l])

        ffn_h = jnp.dot(h, ffn1_w_ref[l],
                        preferred_element_type=jnp.float32) + ffn1_b_ref[l]
        # TODO(synk): HF DistilBERT uses exact erf-GELU; tanh approximation used here.
        ffn_h = jax.nn.gelu(ffn_h, approximate=True)
        ffn_o = jnp.dot(ffn_h, ffn2_w_ref[l],
                        preferred_element_type=jnp.float32) + ffn2_b_ref[l]
        h = _layernorm(h + ffn_o, out_ln_ref[l])

    # CLS pooling -> shared fc -> F.normalize(p=2, dim=1).
    cls = h[0:1, :]                                                # [1, H]
    y = jnp.dot(cls, fc_w_ref[...],
                preferred_element_type=jnp.float32) + fc_b_ref[...]  # [1, OUT]
    norm = jnp.sqrt(jnp.sum(y * y, axis=-1, keepdims=True))
    out_ref[0] = (y / jnp.maximum(norm, 1e-12)).astype(out_ref.dtype)


# ----------------------- parameters (deterministic, synthetic) -----------------------
def make_params(seed=42):
    key = jax.random.PRNGKey(seed)
    ks = iter(jax.random.split(key, 64))

    def init(shape, scale=0.02):
        return scale * jax.random.normal(next(ks), shape, dtype=jnp.float32)

    def ln_init(n):
        return jnp.stack([jnp.ones((n,), jnp.float32), jnp.zeros((n,), jnp.float32)])

    L, H = NUM_LAYERS, HIDDEN
    return {
        "word_emb": init((VOCAB, H)),
        "pos_emb": init((MAX_POS, H)),
        "emb_ln": ln_init(H),                                   # [2, H]
        "qkv_w": init((L, H, 3 * H)),                           # fused Q|K|V
        "qkv_b": jnp.zeros((L, 1, 3 * H), jnp.float32),
        "o_w": init((L, H, H)),
        "o_b": jnp.zeros((L, 1, H), jnp.float32),
        "sa_ln": jnp.stack([ln_init(H)] * L),                   # [L, 2, H]
        "ffn1_w": init((L, H, FFN)),
        "ffn1_b": jnp.zeros((L, 1, FFN), jnp.float32),
        "ffn2_w": init((L, FFN, H)),
        "ffn2_b": jnp.zeros((L, 1, H), jnp.float32),
        "out_ln": jnp.stack([ln_init(H)] * L),                  # [L, 2, H]
        "fc_w": init((H, OUT_DIM)),                             # shared head
        "fc_b": jnp.zeros((1, OUT_DIM), jnp.float32),
    }


# ----------------------- model wrapper -----------------------
def dual_tower_forward(params, query_input_ids, query_attention_mask,
                       doc_input_ids, doc_attention_mask):
    B, S = query_input_ids.shape
    H = HIDDEN

    # Both towers share weights -> run them as one concatenated batch.
    ids = jnp.concatenate([query_input_ids, doc_input_ids], axis=0)          # [2B, S]
    mask = jnp.concatenate([query_attention_mask, doc_attention_mask],
                           axis=0).astype(jnp.float32)[:, None, :]           # [2B, 1, S]
    BT = 2 * B

    # Embedding gather + positional add is glue (gather is not a Pallas-friendly op).
    word = jnp.take(params["word_emb"], ids, axis=0)                         # [2B, S, H]
    pos = params["pos_emb"][:S][None]                                        # [1, S, H]
    x = (word + pos).astype(jnp.float32)

    w_names = ["emb_ln", "qkv_w", "qkv_b", "o_w", "o_b", "sa_ln",
               "ffn1_w", "ffn1_b", "ffn2_w", "ffn2_b", "out_ln", "fc_w", "fc_b"]
    w_args = [params[n] for n in w_names]

    def full_spec(a):
        # Whole (tiny) weight array resident in VMEM; constant block index means
        # Pallas DMAs it once and keeps it across grid steps.
        return pl.BlockSpec(a.shape, lambda i, _nd=a.ndim: (0,) * _nd)

    out = pl.pallas_call(
        _encoder_kernel,
        out_shape=jax.ShapeDtypeStruct((BT, 1, OUT_DIM), jnp.float32),
        grid=(BT,),
        in_specs=[pl.BlockSpec((1, S, H), lambda i: (i, 0, 0)),
                  pl.BlockSpec((1, 1, S), lambda i: (i, 0, 0))]
                 + [full_spec(a) for a in w_args],
        out_specs=pl.BlockSpec((1, 1, OUT_DIM), lambda i: (i, 0, 0)),
        compiler_params=pltpu.CompilerParams(dimension_semantics=("parallel",)),
    )(x, mask, *w_args)

    embeds = out.reshape(BT, OUT_DIM)
    return embeds[:B], embeds[B:]


# ----------------------- main -----------------------
if __name__ == "__main__":
    B, S = 2, 8
    key = jax.random.PRNGKey(0)
    k1, k2 = jax.random.split(key)

    query_input_ids = jax.random.randint(k1, (B, S), 0, VOCAB, dtype=jnp.int32)
    doc_input_ids = jax.random.randint(k2, (B, S), 0, VOCAB, dtype=jnp.int32)
    # masks: padding tokens at the end of some sequences
    query_attention_mask = jnp.array([[1] * S, [1] * (S - 2) + [0, 0]], dtype=jnp.int32)
    doc_attention_mask = jnp.array([[1] * (S - 1) + [0], [1] * S], dtype=jnp.int32)

    params = make_params(seed=42)

    fwd = jax.jit(dual_tower_forward)
    q_embeds, d_embeds = fwd(params, query_input_ids, query_attention_mask,
                             doc_input_ids, doc_attention_mask)
    jax.block_until_ready((q_embeds, d_embeds))

    assert q_embeds.shape == (B, OUT_DIM) and d_embeds.shape == (B, OUT_DIM)
    assert bool(jnp.all(jnp.isfinite(q_embeds))) and bool(jnp.all(jnp.isfinite(d_embeds)))
    # embeddings should be unit-norm (F.normalize semantics)
    assert jnp.allclose(jnp.linalg.norm(q_embeds, axis=1), 1.0, atol=1e-4)
    assert jnp.allclose(jnp.linalg.norm(d_embeds, axis=1), 1.0, atol=1e-4)

    print("KERNEL_OK")
</pallas_src>

<mosaic_0001>
module attributes {stable_mosaic.version = 11 : i64} {
  func.func @_encoder_kernel(%arg0: i32, %arg1: memref<1x8x32xf32, #tpu.memory_space<vmem>>, %arg2: memref<1x1x8xf32, #tpu.memory_space<vmem>>, %arg3: memref<2x32xf32, #tpu.memory_space<vmem>>, %arg4: memref<2x32x96xf32, #tpu.memory_space<vmem>>, %arg5: memref<2x1x96xf32, #tpu.memory_space<vmem>>, %arg6: memref<2x32x32xf32, #tpu.memory_space<vmem>>, %arg7: memref<2x1x32xf32, #tpu.memory_space<vmem>>, %arg8: memref<2x2x32xf32, #tpu.memory_space<vmem>>, %arg9: memref<2x32x64xf32, #tpu.memory_space<vmem>>, %arg10: memref<2x1x64xf32, #tpu.memory_space<vmem>>, %arg11: memref<2x64x32xf32, #tpu.memory_space<vmem>>, %arg12: memref<2x1x32xf32, #tpu.memory_space<vmem>>, %arg13: memref<2x2x32xf32, #tpu.memory_space<vmem>>, %arg14: memref<32x128xf32, #tpu.memory_space<vmem>>, %arg15: memref<1x128xf32, #tpu.memory_space<vmem>>, %arg16: memref<1x1x128xf32, #tpu.memory_space<vmem>>) attributes {dimension_semantics = [#tpu.dimension_semantics<parallel>], iteration_bounds = array<i64: 4>, scalar_prefetch = 0 : i64, scratch_operands = 0 : i64, tpu.core_type = #tpu.core_type<tc>, window_params = [{transform_indices = @transform_0, window_bounds = array<i64: 1, 8, 32>}, {transform_indices = @transform_1, window_bounds = array<i64: 1, 1, 8>}, {pipeline_mode = #tpu.pipeline_mode<synchronous>, transform_indices = @transform_2, window_bounds = array<i64: 2, 32>}, {pipeline_mode = #tpu.pipeline_mode<synchronous>, transform_indices = @transform_3, window_bounds = array<i64: 2, 32, 96>}, {pipeline_mode = #tpu.pipeline_mode<synchronous>, transform_indices = @transform_4, window_bounds = array<i64: 2, 1, 96>}, {pipeline_mode = #tpu.pipeline_mode<synchronous>, transform_indices = @transform_5, window_bounds = array<i64: 2, 32, 32>}, {pipeline_mode = #tpu.pipeline_mode<synchronous>, transform_indices = @transform_6, window_bounds = array<i64: 2, 1, 32>}, {pipeline_mode = #tpu.pipeline_mode<synchronous>, transform_indices = @transform_7, window_bounds = array<i64: 2, 2, 32>}, {pipeline_mode = #tpu.pipeline_mode<synchronous>, transform_indices = @transform_8, window_bounds = array<i64: 2, 32, 64>}, {pipeline_mode = #tpu.pipeline_mode<synchronous>, transform_indices = @transform_9, window_bounds = array<i64: 2, 1, 64>}, {pipeline_mode = #tpu.pipeline_mode<synchronous>, transform_indices = @transform_10, window_bounds = array<i64: 2, 64, 32>}, {pipeline_mode = #tpu.pipeline_mode<synchronous>, transform_indices = @transform_11, window_bounds = array<i64: 2, 1, 32>}, {pipeline_mode = #tpu.pipeline_mode<synchronous>, transform_indices = @transform_12, window_bounds = array<i64: 2, 2, 32>}, {pipeline_mode = #tpu.pipeline_mode<synchronous>, transform_indices = @transform_13, window_bounds = array<i64: 32, 128>}, {pipeline_mode = #tpu.pipeline_mode<synchronous>, transform_indices = @transform_14, window_bounds = array<i64: 1, 128>}, {transform_indices = @transform_15, window_bounds = array<i64: 1, 1, 128>}]} {
    %c0 = arith.constant 0 : index
    %c0_0 = arith.constant 0 : index
    %c0_1 = arith.constant 0 : index
    %0 = vector.load %arg1[%c0, %c0_0, %c0_1] : memref<1x8x32xf32, #tpu.memory_space<vmem>>, vector<1x8x32xf32>
    %1 = vector.shape_cast %0 : vector<1x8x32xf32> to vector<8x32xf32>
    %c0_2 = arith.constant 0 : index
    %c0_3 = arith.constant 0 : index
    %2 = vector.load %arg3[%c0_2, %c0_3] : memref<2x32xf32, #tpu.memory_space<vmem>>, vector<2x32xf32>
    %3 = vector.extract_strided_slice %2 {offsets = [0, 0], sizes = [1, 32], strides = [1, 1]} : vector<2x32xf32> to vector<1x32xf32>
    %4 = vector.extract_strided_slice %2 {offsets = [1, 0], sizes = [1, 32], strides = [1, 1]} : vector<2x32xf32> to vector<1x32xf32>
    %cst = arith.constant dense<0.000000e+00> : vector<8xf32>
    %5 = vector.multi_reduction <add>, %1, %cst [1] : vector<8x32xf32> to vector<8xf32>
    %6 = vector.shape_cast %5 : vector<8xf32> to vector<8x1xf32>
    %cst_4 = arith.constant 3.200000e+01 : f32
    %7 = vector.broadcast %cst_4 : f32 to vector<8x1xf32>
    %8 = arith.divf %6, %7 : vector<8x1xf32>
    %9 = vector.broadcast %8 : vector<8x1xf32> to vector<8x32xf32>
    %10 = arith.subf %1, %9 : vector<8x32xf32>
    %11 = arith.mulf %10, %10 : vector<8x32xf32>
    %cst_5 = arith.constant dense<0.000000e+00> : vector<8xf32>
    %12 = vector.multi_reduction <add>, %11, %cst_5 [1] : vector<8x32xf32> to vector<8xf32>
    %13 = vector.shape_cast %12 : vector<8xf32> to vector<8x1xf32>
    %cst_6 = arith.constant 3.200000e+01 : f32
    %14 = vector.broadcast %cst_6 : f32 to vector<8x1xf32>
    %15 = arith.divf %13, %14 : vector<8x1xf32>
    %16 = vector.broadcast %8 : vector<8x1xf32> to vector<8x32xf32>
    %17 = arith.subf %1, %16 : vector<8x32xf32>
    %cst_7 = arith.constant 9.99999996E-13 : f32
    %18 = vector.broadcast %cst_7 : f32 to vector<8x1xf32>
    %19 = arith.addf %15, %18 : vector<8x1xf32>
    %20 = math.rsqrt %19 : vector<8x1xf32>
    %21 = vector.broadcast %20 : vector<8x1xf32> to vector<8x32xf32>
    %22 = arith.mulf %17, %21 : vector<8x32xf32>
    %23 = vector.broadcast %3 : vector<1x32xf32> to vector<8x32xf32>
    %24 = arith.mulf %22, %23 : vector<8x32xf32>
    %25 = vector.broadcast %4 : vector<1x32xf32> to vector<8x32xf32>
    %26 = arith.addf %24, %25 : vector<8x32xf32>
    %c0_8 = arith.constant 0 : index
    %c0_9 = arith.constant 0 : index
    %c0_10 = arith.constant 0 : index
    %27 = vector.load %arg2[%c0_8, %c0_9, %c0_10] : memref<1x1x8xf32, #tpu.memory_space<vmem>>, vector<1x1x8xf32>
    %28 = vector.shape_cast %27 : vector<1x1x8xf32> to vector<1x8xf32>
    %cst_11 = arith.constant 1.000000e+00 : f32
    %29 = vector.broadcast %cst_11 : f32 to vector<1x8xf32>
    %30 = arith.subf %29, %28 : vector<1x8xf32>
    %cst_12 = arith.constant -1.000000e+09 : f32
    %31 = vector.broadcast %cst_12 : f32 to vector<1x8xf32>
    %32 = arith.mulf %30, %31 : vector<1x8xf32>
    %c0_13 = arith.constant 0 : index
    %c0_14 = arith.constant 0 : index
    %c0_15 = arith.constant 0 : index
    %33 = vector.load %arg4[%c0_13, %c0_14, %c0_15] : memref<2x32x96xf32, #tpu.memory_space<vmem>>, vector<1x32x96xf32>
    %34 = vector.shape_cast %33 : vector<1x32x96xf32> to vector<32x96xf32>
    %cst_16 = arith.constant dense<0.000000e+00> : vector<8x96xf32>
    %35 = tpu.matmul %26, %34, %cst_16 {dimension_numbers = #tpu.dot_dimension_numbers<[1], [0], [0], [1], [0, 0, 1, 1], [], []>} : vector<8x32xf32>, vector<32x96xf32>, vector<8x96xf32> -> vector<8x96xf32>
    %c0_17 = arith.constant 0 : index
    %c0_18 = arith.constant 0 : index
    %c0_19 = arith.constant 0 : index
    %36 = vector.load %arg5[%c0_17, %c0_18, %c0_19] : memref<2x1x96xf32, #tpu.memory_space<vmem>>, vector<1x1x96xf32>
    %37 = vector.shape_cast %36 : vector<1x1x96xf32> to vector<1x96xf32>
    %38 = vector.broadcast %37 : vector<1x96xf32> to vector<8x96xf32>
    %39 = arith.addf %35, %38 : vector<8x96xf32>
    %40 = vector.extract_strided_slice %39 {offsets = [0, 0], sizes = [8, 8], strides = [1, 1]} : vector<8x96xf32> to vector<8x8xf32>
    %41 = vector.extract_strided_slice %39 {offsets = [0, 32], sizes = [8, 8], strides = [1, 1]} : vector<8x96xf32> to vector<8x8xf32>
    %42 = vector.extract_strided_slice %39 {offsets = [0, 64], sizes = [8, 8], strides = [1, 1]} : vector<8x96xf32> to vector<8x8xf32>
    %cst_20 = arith.constant dense<0.000000e+00> : vector<8x8xf32>
    %43 = tpu.matmul %40, %41, %cst_20 {dimension_numbers = #tpu.dot_dimension_numbers<[1], [1], [0], [0], [0, 0, 1, 0], [], []>} : vector<8x8xf32>, vector<8x8xf32>, vector<8x8xf32> -> vector<8x8xf32>
    %cst_21 = arith.constant 0.353553385 : f32
    %44 = vector.broadcast %cst_21 : f32 to vector<8x8xf32>
    %45 = arith.mulf %43, %44 : vector<8x8xf32>
    %46 = vector.broadcast %32 : vector<1x8xf32> to vector<8x8xf32>
    %47 = arith.addf %45, %46 : vector<8x8xf32>
    %cst_22 = arith.constant dense<0xFF800000> : vector<8xf32>
    %48 = vector.multi_reduction <maximumf>, %47, %cst_22 [1] : vector<8x8xf32> to vector<8xf32>
    %49 = vector.shape_cast %48 : vector<8xf32> to vector<8x1xf32>
    %50 = vector.broadcast %49 : vector<8x1xf32> to vector<8x8xf32>
    %51 = arith.subf %47, %50 : vector<8x8xf32>
    %52 = math.exp %51 : vector<8x8xf32>
    %cst_23 = arith.constant dense<0.000000e+00> : vector<8xf32>
    %53 = vector.multi_reduction <add>, %52, %cst_23 [1] : vector<8x8xf32> to vector<8xf32>
    %54 = vector.shape_cast %53 : vector<8xf32> to vector<8x1xf32>
    %55 = tpu.reciprocal %54 {approx = true} : vector<8x1xf32> -> vector<8x1xf32>
    %56 = vector.broadcast %55 : vector<8x1xf32> to vector<8x8xf32>
    %57 = arith.mulf %52, %56 : vector<8x8xf32>
    %cst_24 = arith.constant dense<0.000000e+00> : vector<8x8xf32>
    %58 = tpu.matmul %57, %42, %cst_24 {dimension_numbers = #tpu.dot_dimension_numbers<[1], [0], [0], [1], [0, 0, 1, 1], [], []>} : vector<8x8xf32>, vector<8x8xf32>, vector<8x8xf32> -> vector<8x8xf32>
    %59 = vector.extract_strided_slice %39 {offsets = [0, 8], sizes = [8, 8], strides = [1, 1]} : vector<8x96xf32> to vector<8x8xf32>
    %60 = vector.extract_strided_slice %39 {offsets = [0, 40], sizes = [8, 8], strides = [1, 1]} : vector<8x96xf32> to vector<8x8xf32>
    %61 = vector.extract_strided_slice %39 {offsets = [0, 72], sizes = [8, 8], strides = [1, 1]} : vector<8x96xf32> to vector<8x8xf32>
    %cst_25 = arith.constant dense<0.000000e+00> : vector<8x8xf32>
    %62 = tpu.matmul %59, %60, %cst_25 {dimension_numbers = #tpu.dot_dimension_numbers<[1], [1], [0], [0], [0, 0, 1, 0], [], []>} : vector<8x8xf32>, vector<8x8xf32>, vector<8x8xf32> -> vector<8x8xf32>
    %cst_26 = arith.constant 0.353553385 : f32
    %63 = vector.broadcast %cst_26 : f32 to vector<8x8xf32>
    %64 = arith.mulf %62, %63 : vector<8x8xf32>
    %65 = vector.broadcast %32 : vector<1x8xf32> to vector<8x8xf32>
    %66 = arith.addf %64, %65 : vector<8x8xf32>
    %cst_27 = arith.constant dense<0xFF800000> : vector<8xf32>
    %67 = vector.multi_reduction <maximumf>, %66, %cst_27 [1] : vector<8x8xf32> to vector<8xf32>
    %68 = vector.shape_cast %67 : vector<8xf32> to vector<8x1xf32>
    %69 = vector.broadcast %68 : vector<8x1xf32> to vector<8x8xf32>
    %70 = arith.subf %66, %69 : vector<8x8xf32>
    %71 = math.exp %70 : vector<8x8xf32>
    %cst_28 = arith.constant dense<0.000000e+00> : vector<8xf32>
    %72 = vector.multi_reduction <add>, %71, %cst_28 [1] : vector<8x8xf32> to vector<8xf32>
    %73 = vector.shape_cast %72 : vector<8xf32> to vector<8x1xf32>
    %74 = tpu.reciprocal %73 {approx = true} : vector<8x1xf32> -> vector<8x1xf32>
    %75 = vector.broadcast %74 : vector<8x1xf32> to vector<8x8xf32>
    %76 = arith.mulf %71, %75 : vector<8x8xf32>
    %cst_29 = arith.constant dense<0.000000e+00> : vector<8x8xf32>
    %77 = tpu.matmul %76, %61, %cst_29 {dimension_numbers = #tpu.dot_dimension_numbers<[1], [0], [0], [1], [0, 0, 1, 1], [], []>} : vector<8x8xf32>, vector<8x8xf32>, vector<8x8xf32> -> vector<8x8xf32>
    %78 = vector.extract_strided_slice %39 {offsets = [0, 16], sizes = [8, 8], strides = [1, 1]} : vector<8x96xf32> to vector<8x8xf32>
    %79 = vector.extract_strided_slice %39 {offsets = [0, 48], sizes = [8, 8], strides = [1, 1]} : vector<8x96xf32> to vector<8x8xf32>
    %80 = vector.extract_strided_slice %39 {offsets = [0, 80], sizes = [8, 8], strides = [1, 1]} : vector<8x96xf32> to vector<8x8xf32>
    %cst_30 = arith.constant dense<0.000000e+00> : vector<8x8xf32>
    %81 = tpu.matmul %78, %79, %cst_30 {dimension_numbers = #tpu.dot_dimension_numbers<[1], [1], [0], [0], [0, 0, 1, 0], [], []>} : vector<8x8xf32>, vector<8x8xf32>, vector<8x8xf32> -> vector<8x8xf32>
    %cst_31 = arith.constant 0.353553385 : f32
    %82 = vector.broadcast %cst_31 : f32 to vector<8x8xf32>
    %83 = arith.mulf %81, %82 : vector<8x8xf32>
    %84 = vector.broadcast %32 : vector<1x8xf32> to vector<8x8xf32>
    %85 = arith.addf %83, %84 : vector<8x8xf32>
    %cst_32 = arith.constant dense<0xFF800000> : vector<8xf32>
    %86 = vector.multi_reduction <maximumf>, %85, %cst_32 [1] : vector<8x8xf32> to vector<8xf32>
    %87 = vector.shape_cast %86 : vector<8xf32> to vector<8x1xf32>
    %88 = vector.broadcast %87 : vector<8x1xf32> to vector<8x8xf32>
    %89 = arith.subf %85, %88 : vector<8x8xf32>
    %90 = math.exp %89 : vector<8x8xf32>
    %cst_33 = arith.constant dense<0.000000e+00> : vector<8xf32>
    %91 = vector.multi_reduction <add>, %90, %cst_33 [1] : vector<8x8xf32> to vector<8xf32>
    %92 = vector.shape_cast %91 : vector<8xf32> to vector<8x1xf32>
    %93 = tpu.reciprocal %92 {approx = true} : vector<8x1xf32> -> vector<8x1xf32>
    %94 = vector.broadcast %93 : vector<8x1xf32> to vector<8x8xf32>
    %95 = arith.mulf %90, %94 : vector<8x8xf32>
    %cst_34 = arith.constant dense<0.000000e+00> : vector<8x8xf32>
    %96 = tpu.matmul %95, %80, %cst_34 {dimension_numbers = #tpu.dot_dimension_numbers<[1], [0], [0], [1], [0, 0, 1, 1], [], []>} : vector<8x8xf32>, vector<8x8xf32>, vector<8x8xf32> -> vector<8x8xf32>
    %97 = vector.extract_strided_slice %39 {offsets = [0, 24], sizes = [8, 8], strides = [1, 1]} : vector<8x96xf32> to vector<8x8xf32>
    %98 = vector.extract_strided_slice %39 {offsets = [0, 56], sizes = [8, 8], strides = [1, 1]} : vector<8x96xf32> to vector<8x8xf32>
    %99 = vector.extract_strided_slice %39 {offsets = [0, 88], sizes = [8, 8], strides = [1, 1]} : vector<8x96xf32> to vector<8x8xf32>
    %cst_35 = arith.constant dense<0.000000e+00> : vector<8x8xf32>
    %100 = tpu.matmul %97, %98, %cst_35 {dimension_numbers = #tpu.dot_dimension_numbers<[1], [1], [0], [0], [0, 0, 1, 0], [], []>} : vector<8x8xf32>, vector<8x8xf32>, vector<8x8xf32> -> vector<8x8xf32>
    %cst_36 = arith.constant 0.353553385 : f32
    %101 = vector.broadcast %cst_36 : f32 to vector<8x8xf32>
    %102 = arith.mulf %100, %101 : vector<8x8xf32>
    %103 = vector.broadcast %32 : vector<1x8xf32> to vector<8x8xf32>
    %104 = arith.addf %102, %103 : vector<8x8xf32>
    %cst_37 = arith.constant dense<0xFF800000> : vector<8xf32>
    %105 = vector.multi_reduction <maximumf>, %104, %cst_37 [1] : vector<8x8xf32> to vector<8xf32>
    %106 = vector.shape_cast %105 : vector<8xf32> to vector<8x1xf32>
    %107 = vector.broadcast %106 : vector<8x1xf32> to vector<8x8xf32>
    %108 = arith.subf %104, %107 : vector<8x8xf32>
    %109 = math.exp %108 : vector<8x8xf32>
    %cst_38 = arith.constant dense<0.000000e+00> : vector<8xf32>
    %110 = vector.multi_reduction <add>, %109, %cst_38 [1] : vector<8x8xf32> to vector<8xf32>
    %111 = vector.shape_cast %110 : vector<8xf32> to vector<8x1xf32>
    %112 = tpu.reciprocal %111 {approx = true} : vector<8x1xf32> -> vector<8x1xf32>
    %113 = vector.broadcast %112 : vector<8x1xf32> to vector<8x8xf32>
    %114 = arith.mulf %109, %113 : vector<8x8xf32>
    %cst_39 = arith.constant dense<0.000000e+00> : vector<8x8xf32>
    %115 = tpu.matmul %114, %99, %cst_39 {dimension_numbers = #tpu.dot_dimension_numbers<[1], [0], [0], [1], [0, 0, 1, 1], [], []>} : vector<8x8xf32>, vector<8x8xf32>, vector<8x8xf32> -> vector<8x8xf32>
    %116 = tpu.concatenate %58, %77, %96, %115 in 1 : vector<8x8xf32>, vector<8x8xf32>, vector<8x8xf32>, vector<8x8xf32> -> vector<8x32xf32>
    %c0_40 = arith.constant 0 : index
    %c0_41 = arith.constant 0 : index
    %c0_42 = arith.constant 0 : index
    %117 = vector.load %arg6[%c0_40, %c0_41, %c0_42] : memref<2x32x32xf32, #tpu.memory_space<vmem>>, vector<1x32x32xf32>
    %118 = vector.shape_cast %117 : vector<1x32x32xf32> to vector<32x32xf32>
    %cst_43 = arith.constant dense<0.000000e+00> : vector<8x32xf32>
    %119 = tpu.matmul %116, %118, %cst_43 {dimension_numbers = #tpu.dot_dimension_numbers<[1], [0], [0], [1], [0, 0, 1, 1], [], []>} : vector<8x32xf32>, vector<32x32xf32>, vector<8x32xf32> -> vector<8x32xf32>
    %c0_44 = arith.constant 0 : index
    %c0_45 = arith.constant 0 : index
    %c0_46 = arith.constant 0 : index
    %120 = vector.load %arg7[%c0_44, %c0_45, %c0_46] : memref<2x1x32xf32, #tpu.memory_space<vmem>>, vector<1x1x32xf32>
    %121 = vector.shape_cast %120 : vector<1x1x32xf32> to vector<1x32xf32>
    %122 = vector.broadcast %121 : vector<1x32xf32> to vector<8x32xf32>
    %123 = arith.addf %119, %122 : vector<8x32xf32>
    %124 = arith.addf %26, %123 : vector<8x32xf32>
    %c0_47 = arith.constant 0 : index
    %c0_48 = arith.constant 0 : index
    %c0_49 = arith.constant 0 : index
    %125 = vector.load %arg8[%c0_47, %c0_48, %c0_49] : memref<2x2x32xf32, #tpu.memory_space<vmem>>, vector<1x2x32xf32>
    %126 = vector.shape_cast %125 : vector<1x2x32xf32> to vector<2x32xf32>
    %127 = vector.extract_strided_slice %126 {offsets = [0, 0], sizes = [1, 32], strides = [1, 1]} : vector<2x32xf32> to vector<1x32xf32>
    %128 = vector.extract_strided_slice %126 {offsets = [1, 0], sizes = [1, 32], strides = [1, 1]} : vector<2x32xf32> to vector<1x32xf32>
    %cst_50 = arith.constant dense<0.000000e+00> : vector<8xf32>
    %129 = vector.multi_reduction <add>, %124, %cst_50 [1] : vector<8x32xf32> to vector<8xf32>
    %130 = vector.shape_cast %129 : vector<8xf32> to vector<8x1xf32>
    %cst_51 = arith.constant 3.200000e+01 : f32
    %131 = vector.broadcast %cst_51 : f32 to vector<8x1xf32>
    %132 = arith.divf %130, %131 : vector<8x1xf32>
    %133 = vector.broadcast %132 : vector<8x1xf32> to vector<8x32xf32>
    %134 = arith.subf %124, %133 : vector<8x32xf32>
    %135 = arith.mulf %134, %134 : vector<8x32xf32>
    %cst_52 = arith.constant dense<0.000000e+00> : vector<8xf32>
    %136 = vector.multi_reduction <add>, %135, %cst_52 [1] : vector<8x32xf32> to vector<8xf32>
    %137 = vector.shape_cast %136 : vector<8xf32> to vector<8x1xf32>
    %cst_53 = arith.constant 3.200000e+01 : f32
    %138 = vector.broadcast %cst_53 : f32 to vector<8x1xf32>
    %139 = arith.divf %137, %138 : vector<8x1xf32>
    %140 = vector.broadcast %132 : vector<8x1xf32> to vector<8x32xf32>
    %141 = arith.subf %124, %140 : vector<8x32xf32>
    %cst_54 = arith.constant 9.99999996E-13 : f32
    %142 = vector.broadcast %cst_54 : f32 to vector<8x1xf32>
    %143 = arith.addf %139, %142 : vector<8x1xf32>
    %144 = math.rsqrt %143 : vector<8x1xf32>
    %145 = vector.broadcast %144 : vector<8x1xf32> to vector<8x32xf32>
    %146 = arith.mulf %141, %145 : vector<8x32xf32>
    %147 = vector.broadcast %127 : vector<1x32xf32> to vector<8x32xf32>
    %148 = arith.mulf %146, %147 : vector<8x32xf32>
    %149 = vector.broadcast %128 : vector<1x32xf32> to vector<8x32xf32>
    %150 = arith.addf %148, %149 : vector<8x32xf32>
    %c0_55 = arith.constant 0 : index
    %c0_56 = arith.constant 0 : index
    %c0_57 = arith.constant 0 : index
    %151 = vector.load %arg9[%c0_55, %c0_56, %c0_57] : memref<2x32x64xf32, #tpu.memory_space<vmem>>, vector<1x32x64xf32>
    %152 = vector.shape_cast %151 : vector<1x32x64xf32> to vector<32x64xf32>
    %cst_58 = arith.constant dense<0.000000e+00> : vector<8x64xf32>
    %153 = tpu.matmul %150, %152, %cst_58 {dimension_numbers = #tpu.dot_dimension_numbers<[1], [0], [0], [1], [0, 0, 1, 1], [], []>} : vector<8x32xf32>, vector<32x64xf32>, vector<8x64xf32> -> vector<8x64xf32>
    %c0_59 = arith.constant 0 : index
    %c0_60 = arith.constant 0 : index
    %c0_61 = arith.constant 0 : index
    %154 = vector.load %arg10[%c0_59, %c0_60, %c0_61] : memref<2x1x64xf32, #tpu.memory_space<vmem>>, vector<1x1x64xf32>
    %155 = vector.shape_cast %154 : vector<1x1x64xf32> to vector<1x64xf32>
    %156 = vector.broadcast %155 : vector<1x64xf32> to vector<8x64xf32>
    %157 = arith.addf %153, %156 : vector<8x64xf32>
    %158 = arith.mulf %157, %157 : vector<8x64xf32>
    %159 = arith.mulf %157, %158 : vector<8x64xf32>
    %cst_62 = arith.constant 4.471500e-02 : f32
    %160 = vector.broadcast %cst_62 : f32 to vector<8x64xf32>
    %161 = arith.mulf %160, %159 : vector<8x64xf32>
    %162 = arith.addf %157, %161 : vector<8x64xf32>
    %cst_63 = arith.constant 0.797884583 : f32
    %163 = vector.broadcast %cst_63 : f32 to vector<8x64xf32>
    %164 = arith.mulf %163, %162 : vector<8x64xf32>
    %165 = math.tanh %164 : vector<8x64xf32>
    %cst_64 = arith.constant 1.000000e+00 : f32
    %166 = vector.broadcast %cst_64 : f32 to vector<8x64xf32>
    %167 = arith.addf %166, %165 : vector<8x64xf32>
    %cst_65 = arith.constant 5.000000e-01 : f32
    %168 = vector.broadcast %cst_65 : f32 to vector<8x64xf32>
    %169 = arith.mulf %168, %167 : vector<8x64xf32>
    %170 = arith.mulf %157, %169 : vector<8x64xf32>
    %c0_66 = arith.constant 0 : index
    %c0_67 = arith.constant 0 : index
    %c0_68 = arith.constant 0 : index
    %171 = vector.load %arg11[%c0_66, %c0_67, %c0_68] : memref<2x64x32xf32, #tpu.memory_space<vmem>>, vector<1x64x32xf32>
    %172 = vector.shape_cast %171 : vector<1x64x32xf32> to vector<64x32xf32>
    %cst_69 = arith.constant dense<0.000000e+00> : vector<8x32xf32>
    %173 = tpu.matmul %170, %172, %cst_69 {dimension_numbers = #tpu.dot_dimension_numbers<[1], [0], [0], [1], [0, 0, 1, 1], [], []>} : vector<8x64xf32>, vector<64x32xf32>, vector<8x32xf32> -> vector<8x32xf32>
    %c0_70 = arith.constant 0 : index
    %c0_71 = arith.constant 0 : index
    %c0_72 = arith.constant 0 : index
    %174 = vector.load %arg12[%c0_70, %c0_71, %c0_72] : memref<2x1x32xf32, #tpu.memory_space<vmem>>, vector<1x1x32xf32>
    %175 = vector.shape_cast %174 : vector<1x1x32xf32> to vector<1x32xf32>
    %176 = vector.broadcast %175 : vector<1x32xf32> to vector<8x32xf32>
    %177 = arith.addf %173, %176 : vector<8x32xf32>
    %178 = arith.addf %150, %177 : vector<8x32xf32>
    %c0_73 = arith.constant 0 : index
    %c0_74 = arith.constant 0 : index
    %c0_75 = arith.constant 0 : index
    %179 = vector.load %arg13[%c0_73, %c0_74, %c0_75] : memref<2x2x32xf32, #tpu.memory_space<vmem>>, vector<1x2x32xf32>
    %180 = vector.shape_cast %179 : vector<1x2x32xf32> to vector<2x32xf32>
    %181 = vector.extract_strided_slice %180 {offsets = [0, 0], sizes = [1, 32], strides = [1, 1]} : vector<2x32xf32> to vector<1x32xf32>
    %182 = vector.extract_strided_slice %180 {offsets = [1, 0], sizes = [1, 32], strides = [1, 1]} : vector<2x32xf32> to vector<1x32xf32>
    %cst_76 = arith.constant dense<0.000000e+00> : vector<8xf32>
    %183 = vector.multi_reduction <add>, %178, %cst_76 [1] : vector<8x32xf32> to vector<8xf32>
    %184 = vector.shape_cast %183 : vector<8xf32> to vector<8x1xf32>
    %cst_77 = arith.constant 3.200000e+01 : f32
    %185 = vector.broadcast %cst_77 : f32 to vector<8x1xf32>
    %186 = arith.divf %184, %185 : vector<8x1xf32>
    %187 = vector.broadcast %186 : vector<8x1xf32> to vector<8x32xf32>
    %188 = arith.subf %178, %187 : vector<8x32xf32>
    %189 = arith.mulf %188, %188 : vector<8x32xf32>
    %cst_78 = arith.constant dense<0.000000e+00> : vector<8xf32>
    %190 = vector.multi_reduction <add>, %189, %cst_78 [1] : vector<8x32xf32> to vector<8xf32>
    %191 = vector.shape_cast %190 : vector<8xf32> to vector<8x1xf32>
    %cst_79 = arith.constant 3.200000e+01 : f32
    %192 = vector.broadcast %cst_79 : f32 to vector<8x1xf32>
    %193 = arith.divf %191, %192 : vector<8x1xf32>
    %194 = vector.broadcast %186 : vector<8x1xf32> to vector<8x32xf32>
    %195 = arith.subf %178, %194 : vector<8x32xf32>
    %cst_80 = arith.constant 9.99999996E-13 : f32
    %196 = vector.broadcast %cst_80 : f32 to vector<8x1xf32>
    %197 = arith.addf %193, %196 : vector<8x1xf32>
    %198 = math.rsqrt %197 : vector<8x1xf32>
    %199 = vector.broadcast %198 : vector<8x1xf32> to vector<8x32xf32>
    %200 = arith.mulf %195, %199 : vector<8x32xf32>
    %201 = vector.broadcast %181 : vector<1x32xf32> to vector<8x32xf32>
    %202 = arith.mulf %200, %201 : vector<8x32xf32>
    %203 = vector.broadcast %182 : vector<1x32xf32> to vector<8x32xf32>
    %204 = arith.addf %202, %203 : vector<8x32xf32>
    %c1 = arith.constant 1 : index
    %c0_81 = arith.constant 0 : index
    %c0_82 = arith.constant 0 : index
    %205 = vector.load %arg4[%c1, %c0_81, %c0_82] : memref<2x32x96xf32, #tpu.memory_space<vmem>>, vector<1x32x96xf32>
    %206 = vector.shape_cast %205 : vector<1x32x96xf32> to vector<32x96xf32>
    %cst_83 = arith.constant dense<0.000000e+00> : vector<8x96xf32>
    %207 = tpu.matmul %204, %206, %cst_83 {dimension_numbers = #tpu.dot_dimension_numbers<[1], [0], [0], [1], [0, 0, 1, 1], [], []>} : vector<8x32xf32>, vector<32x96xf32>, vector<8x96xf32> -> vector<8x96xf32>
    %c1_84 = arith.constant 1 : index
    %c0_85 = arith.constant 0 : index
    %c0_86 = arith.constant 0 : index
    %208 = vector.load %arg5[%c1_84, %c0_85, %c0_86] : memref<2x1x96xf32, #tpu.memory_space<vmem>>, vector<1x1x96xf32>
    %209 = vector.shape_cast %208 : vector<1x1x96xf32> to vector<1x96xf32>
    %210 = vector.broadcast %209 : vector<1x96xf32> to vector<8x96xf32>
    %211 = arith.addf %207, %210 : vector<8x96xf32>
    %212 = vector.extract_strided_slice %211 {offsets = [0, 0], sizes = [8, 8], strides = [1, 1]} : vector<8x96xf32> to vector<8x8xf32>
    %213 = vector.extract_strided_slice %211 {offsets = [0, 32], sizes = [8, 8], strides = [1, 1]} : vector<8x96xf32> to vector<8x8xf32>
    %214 = vector.extract_strided_slice %211 {offsets = [0, 64], sizes = [8, 8], strides = [1, 1]} : vector<8x96xf32> to vector<8x8xf32>
    %cst_87 = arith.constant dense<0.000000e+00> : vector<8x8xf32>
    %215 = tpu.matmul %212, %213, %cst_87 {dimension_numbers = #tpu.dot_dimension_numbers<[1], [1], [0], [0], [0, 0, 1, 0], [], []>} : vector<8x8xf32>, vector<8x8xf32>, vector<8x8xf32> -> vector<8x8xf32>
    %cst_88 = arith.constant 0.353553385 : f32
    %216 = vector.broadcast %cst_88 : f32 to vector<8x8xf32>
    %217 = arith.mulf %215, %216 : vector<8x8xf32>
    %218 = vector.broadcast %32 : vector<1x8xf32> to vector<8x8xf32>
    %219 = arith.addf %217, %218 : vector<8x8xf32>
    %cst_89 = arith.constant dense<0xFF800000> : vector<8xf32>
    %220 = vector.multi_reduction <maximumf>, %219, %cst_89 [1] : vector<8x8xf32> to vector<8xf32>
    %221 = vector.shape_cast %220 : vector<8xf32> to vector<8x1xf32>
    %222 = vector.broadcast %221 : vector<8x1xf32> to vector<8x8xf32>
    %223 = arith.subf %219, %222 : vector<8x8xf32>
    %224 = math.exp %223 : vector<8x8xf32>
    %cst_90 = arith.constant dense<0.000000e+00> : vector<8xf32>
    %225 = vector.multi_reduction <add>, %224, %cst_90 [1] : vector<8x8xf32> to vector<8xf32>
    %226 = vector.shape_cast %225 : vector<8xf32> to vector<8x1xf32>
    %227 = tpu.reciprocal %226 {approx = true} : vector<8x1xf32> -> vector<8x1xf32>
    %228 = vector.broadcast %227 : vector<8x1xf32> to vector<8x8xf32>
    %229 = arith.mulf %224, %228 : vector<8x8xf32>
    %cst_91 = arith.constant dense<0.000000e+00> : vector<8x8xf32>
    %230 = tpu.matmul %229, %214, %cst_91 {dimension_numbers = #tpu.dot_dimension_numbers<[1], [0], [0], [1], [0, 0, 1, 1], [], []>} : vector<8x8xf32>, vector<8x8xf32>, vector<8x8xf32> -> vector<8x8xf32>
    %231 = vector.extract_strided_slice %211 {offsets = [0, 8], sizes = [8, 8], strides = [1, 1]} : vector<8x96xf32> to vector<8x8xf32>
    %232 = vector.extract_strided_slice %211 {offsets = [0, 40], sizes = [8, 8], strides = [1, 1]} : vector<8x96xf32> to vector<8x8xf32>
    %233 = vector.extract_strided_slice %211 {offsets = [0, 72], sizes = [8, 8], strides = [1, 1]} : vector<8x96xf32> to vector<8x8xf32>
    %cst_92 = arith.constant dense<0.000000e+00> : vector<8x8xf32>
    %234 = tpu.matmul %231, %232, %cst_92 {dimension_numbers = #tpu.dot_dimension_numbers<[1], [1], [0], [0], [0, 0, 1, 0], [], []>} : vector<8x8xf32>, vector<8x8xf32>, vector<8x8xf32> -> vector<8x8xf32>
    %cst_93 = arith.constant 0.353553385 : f32
    %235 = vector.broadcast %cst_93 : f32 to vector<8x8xf32>
    %236 = arith.mulf %234, %235 : vector<8x8xf32>
    %237 = vector.broadcast %32 : vector<1x8xf32> to vector<8x8xf32>
    %238 = arith.addf %236, %237 : vector<8x8xf32>
    %cst_94 = arith.constant dense<0xFF800000> : vector<8xf32>
    %239 = vector.multi_reduction <maximumf>, %238, %cst_94 [1] : vector<8x8xf32> to vector<8xf32>
    %240 = vector.shape_cast %239 : vector<8xf32> to vector<8x1xf32>
    %241 = vector.broadcast %240 : vector<8x1xf32> to vector<8x8xf32>
    %242 = arith.subf %238, %241 : vector<8x8xf32>
    %243 = math.exp %242 : vector<8x8xf32>
    %cst_95 = arith.constant dense<0.000000e+00> : vector<8xf32>
    %244 = vector.multi_reduction <add>, %243, %cst_95 [1] : vector<8x8xf32> to vector<8xf32>
    %245 = vector.shape_cast %244 : vector<8xf32> to vector<8x1xf32>
    %246 = tpu.reciprocal %245 {approx = true} : vector<8x1xf32> -> vector<8x1xf32>
    %247 = vector.broadcast %246 : vector<8x1xf32> to vector<8x8xf32>
    %248 = arith.mulf %243, %247 : vector<8x8xf32>
    %cst_96 = arith.constant dense<0.000000e+00> : vector<8x8xf32>
    %249 = tpu.matmul %248, %233, %cst_96 {dimension_numbers = #tpu.dot_dimension_numbers<[1], [0], [0], [1], [0, 0, 1, 1], [], []>} : vector<8x8xf32>, vector<8x8xf32>, vector<8x8xf32> -> vector<8x8xf32>
    %250 = vector.extract_strided_slice %211 {offsets = [0, 16], sizes = [8, 8], strides = [1, 1]} : vector<8x96xf32> to vector<8x8xf32>
    %251 = vector.extract_strided_slice %211 {offsets = [0, 48], sizes = [8, 8], strides = [1, 1]} : vector<8x96xf32> to vector<8x8xf32>
    %252 = vector.extract_strided_slice %211 {offsets = [0, 80], sizes = [8, 8], strides = [1, 1]} : vector<8x96xf32> to vector<8x8xf32>
    %cst_97 = arith.constant dense<0.000000e+00> : vector<8x8xf32>
    %253 = tpu.matmul %250, %251, %cst_97 {dimension_numbers = #tpu.dot_dimension_numbers<[1], [1], [0], [0], [0, 0, 1, 0], [], []>} : vector<8x8xf32>, vector<8x8xf32>, vector<8x8xf32> -> vector<8x8xf32>
    %cst_98 = arith.constant 0.353553385 : f32
    %254 = vector.broadcast %cst_98 : f32 to vector<8x8xf32>
    %255 = arith.mulf %253, %254 : vector<8x8xf32>
    %256 = vector.broadcast %32 : vector<1x8xf32> to vector<8x8xf32>
    %257 = arith.addf %255, %256 : vector<8x8xf32>
    %cst_99 = arith.constant dense<0xFF800000> : vector<8xf32>
    %258 = vector.multi_reduction <maximumf>, %257, %cst_99 [1] : vector<8x8xf32> to vector<8xf32>
    %259 = vector.shape_cast %258 : vector<8xf32> to vector<8x1xf32>
    %260 = vector.broadcast %259 : vector<8x1xf32> to vector<8x8xf32>
    %261 = arith.subf %257, %260 : vector<8x8xf32>
    %262 = math.exp %261 : vector<8x8xf32>
    %cst_100 = arith.constant dense<0.000000e+00> : vector<8xf32>
    %263 = vector.multi_reduction <add>, %262, %cst_100 [1] : vector<8x8xf32> to vector<8xf32>
    %264 = vector.shape_cast %263 : vector<8xf32> to vector<8x1xf32>
    %265 = tpu.reciprocal %264 {approx = true} : vector<8x1xf32> -> vector<8x1xf32>
    %266 = vector.broadcast %265 : vector<8x1xf32> to vector<8x8xf32>
    %267 = arith.mulf %262, %266 : vector<8x8xf32>
    %cst_101 = arith.constant dense<0.000000e+00> : vector<8x8xf32>
    %268 = tpu.matmul %267, %252, %cst_101 {dimension_numbers = #tpu.dot_dimension_numbers<[1], [0], [0], [1], [0, 0, 1, 1], [], []>} : vector<8x8xf32>, vector<8x8xf32>, vector<8x8xf32> -> vector<8x8xf32>
    %269 = vector.extract_strided_slice %211 {offsets = [0, 24], sizes = [8, 8], strides = [1, 1]} : vector<8x96xf32> to vector<8x8xf32>
    %270 = vector.extract_strided_slice %211 {offsets = [0, 56], sizes = [8, 8], strides = [1, 1]} : vector<8x96xf32> to vector<8x8xf32>
    %271 = vector.extract_strided_slice %211 {offsets = [0, 88], sizes = [8, 8], strides = [1, 1]} : vector<8x96xf32> to vector<8x8xf32>
    %cst_102 = arith.constant dense<0.000000e+00> : vector<8x8xf32>
    %272 = tpu.matmul %269, %270, %cst_102 {dimension_numbers = #tpu.dot_dimension_numbers<[1], [1], [0], [0], [0, 0, 1, 0], [], []>} : vector<8x8xf32>, vector<8x8xf32>, vector<8x8xf32> -> vector<8x8xf32>
    %cst_103 = arith.constant 0.353553385 : f32
    %273 = vector.broadcast %cst_103 : f32 to vector<8x8xf32>
    %274 = arith.mulf %272, %273 : vector<8x8xf32>
    %275 = vector.broadcast %32 : vector<1x8xf32> to vector<8x8xf32>
    %276 = arith.addf %274, %275 : vector<8x8xf32>
    %cst_104 = arith.constant dense<0xFF800000> : vector<8xf32>
    %277 = vector.multi_reduction <maximumf>, %276, %cst_104 [1] : vector<8x8xf32> to vector<8xf32>
    %278 = vector.shape_cast %277 : vector<8xf32> to vector<8x1xf32>
    %279 = vector.broadcast %278 : vector<8x1xf32> to vector<8x8xf32>
    %280 = arith.subf %276, %279 : vector<8x8xf32>
    %281 = math.exp %280 : vector<8x8xf32>
    %cst_105 = arith.constant dense<0.000000e+00> : vector<8xf32>
    %282 = vector.multi_reduction <add>, %281, %cst_105 [1] : vector<8x8xf32> to vector<8xf32>
    %283 = vector.shape_cast %282 : vector<8xf32> to vector<8x1xf32>
    %284 = tpu.reciprocal %283 {approx = true} : vector<8x1xf32> -> vector<8x1xf32>
    %285 = vector.broadcast %284 : vector<8x1xf32> to vector<8x8xf32>
    %286 = arith.mulf %281, %285 : vector<8x8xf32>
    %cst_106 = arith.constant dense<0.000000e+00> : vector<8x8xf32>
    %287 = tpu.matmul %286, %271, %cst_106 {dimension_numbers = #tpu.dot_dimension_numbers<[1], [0], [0], [1], [0, 0, 1, 1], [], []>} : vector<8x8xf32>, vector<8x8xf32>, vector<8x8xf32> -> vector<8x8xf32>
    %288 = tpu.concatenate %230, %249, %268, %287 in 1 : vector<8x8xf32>, vector<8x8xf32>, vector<8x8xf32>, vector<8x8xf32> -> vector<8x32xf32>
    %c1_107 = arith.constant 1 : index
    %c0_108 = arith.constant 0 : index
    %c0_109 = arith.constant 0 : index
    %289 = vector.load %arg6[%c1_107, %c0_108, %c0_109] : memref<2x32x32xf32, #tpu.memory_space<vmem>>, vector<1x32x32xf32>
    %290 = vector.shape_cast %289 : vector<1x32x32xf32> to vector<32x32xf32>
    %cst_110 = arith.constant dense<0.000000e+00> : vector<8x32xf32>
    %291 = tpu.matmul %288, %290, %cst_110 {dimension_numbers = #tpu.dot_dimension_numbers<[1], [0], [0], [1], [0, 0, 1, 1], [], []>} : vector<8x32xf32>, vector<32x32xf32>, vector<8x32xf32> -> vector<8x32xf32>
    %c1_111 = arith.constant 1 : index
    %c0_112 = arith.constant 0 : index
    %c0_113 = arith.constant 0 : index
    %292 = vector.load %arg7[%c1_111, %c0_112, %c0_113] : memref<2x1x32xf32, #tpu.memory_space<vmem>>, vector<1x1x32xf32>
    %293 = vector.shape_cast %292 : vector<1x1x32xf32> to vector<1x32xf32>
    %294 = vector.broadcast %293 : vector<1x32xf32> to vector<8x32xf32>
    %295 = arith.addf %291, %294 : vector<8x32xf32>
    %296 = arith.addf %204, %295 : vector<8x32xf32>
    %c1_114 = arith.constant 1 : index
    %c0_115 = arith.constant 0 : index
    %c0_116 = arith.constant 0 : index
    %297 = vector.load %arg8[%c1_114, %c0_115, %c0_116] : memref<2x2x32xf32, #tpu.memory_space<vmem>>, vector<1x2x32xf32>
    %298 = vector.shape_cast %297 : vector<1x2x32xf32> to vector<2x32xf32>
    %299 = vector.extract_strided_slice %298 {offsets = [0, 0], sizes = [1, 32], strides = [1, 1]} : vector<2x32xf32> to vector<1x32xf32>
    %300 = vector.extract_strided_slice %298 {offsets = [1, 0], sizes = [1, 32], strides = [1, 1]} : vector<2x32xf32> to vector<1x32xf32>
    %cst_117 = arith.constant dense<0.000000e+00> : vector<8xf32>
    %301 = vector.multi_reduction <add>, %296, %cst_117 [1] : vector<8x32xf32> to vector<8xf32>
    %302 = vector.shape_cast %301 : vector<8xf32> to vector<8x1xf32>
    %cst_118 = arith.constant 3.200000e+01 : f32
    %303 = vector.broadcast %cst_118 : f32 to vector<8x1xf32>
    %304 = arith.divf %302, %303 : vector<8x1xf32>
    %305 = vector.broadcast %304 : vector<8x1xf32> to vector<8x32xf32>
    %306 = arith.subf %296, %305 : vector<8x32xf32>
    %307 = arith.mulf %306, %306 : vector<8x32xf32>
    %cst_119 = arith.constant dense<0.000000e+00> : vector<8xf32>
    %308 = vector.multi_reduction <add>, %307, %cst_119 [1] : vector<8x32xf32> to vector<8xf32>
    %309 = vector.shape_cast %308 : vector<8xf32> to vector<8x1xf32>
    %cst_120 = arith.constant 3.200000e+01 : f32
    %310 = vector.broadcast %cst_120 : f32 to vector<8x1xf32>
    %311 = arith.divf %309, %310 : vector<8x1xf32>
    %312 = vector.broadcast %304 : vector<8x1xf32> to vector<8x32xf32>
    %313 = arith.subf %296, %312 : vector<8x32xf32>
    %cst_121 = arith.constant 9.99999996E-13 : f32
    %314 = vector.broadcast %cst_121 : f32 to vector<8x1xf32>
    %315 = arith.addf %311, %314 : vector<8x1xf32>
    %316 = math.rsqrt %315 : vector<8x1xf32>
    %317 = vector.broadcast %316 : vector<8x1xf32> to vector<8x32xf32>
    %318 = arith.mulf %313, %317 : vector<8x32xf32>
    %319 = vector.broadcast %299 : vector<1x32xf32> to vector<8x32xf32>
    %320 = arith.mulf %318, %319 : vector<8x32xf32>
    %321 = vector.broadcast %300 : vector<1x32xf32> to vector<8x32xf32>
    %322 = arith.addf %320, %321 : vector<8x32xf32>
    %c1_122 = arith.constant 1 : index
    %c0_123 = arith.constant 0 : index
    %c0_124 = arith.constant 0 : index
    %323 = vector.load %arg9[%c1_122, %c0_123, %c0_124] : memref<2x32x64xf32, #tpu.memory_space<vmem>>, vector<1x32x64xf32>
    %324 = vector.shape_cast %323 : vector<1x32x64xf32> to vector<32x64xf32>
    %cst_125 = arith.constant dense<0.000000e+00> : vector<8x64xf32>
    %325 = tpu.matmul %322, %324, %cst_125 {dimension_numbers = #tpu.dot_dimension_numbers<[1], [0], [0], [1], [0, 0, 1, 1], [], []>} : vector<8x32xf32>, vector<32x64xf32>, vector<8x64xf32> -> vector<8x64xf32>
    %c1_126 = arith.constant 1 : index
    %c0_127 = arith.constant 0 : index
    %c0_128 = arith.constant 0 : index
    %326 = vector.load %arg10[%c1_126, %c0_127, %c0_128] : memref<2x1x64xf32, #tpu.memory_space<vmem>>, vector<1x1x64xf32>
    %327 = vector.shape_cast %326 : vector<1x1x64xf32> to vector<1x64xf32>
    %328 = vector.broadcast %327 : vector<1x64xf32> to vector<8x64xf32>
    %329 = arith.addf %325, %328 : vector<8x64xf32>
    %330 = arith.mulf %329, %329 : vector<8x64xf32>
    %331 = arith.mulf %329, %330 : vector<8x64xf32>
    %cst_129 = arith.constant 4.471500e-02 : f32
    %332 = vector.broadcast %cst_129 : f32 to vector<8x64xf32>
    %333 = arith.mulf %332, %331 : vector<8x64xf32>
    %334 = arith.addf %329, %333 : vector<8x64xf32>
    %cst_130 = arith.constant 0.797884583 : f32
    %335 = vector.broadcast %cst_130 : f32 to vector<8x64xf32>
    %336 = arith.mulf %335, %334 : vector<8x64xf32>
    %337 = math.tanh %336 : vector<8x64xf32>
    %cst_131 = arith.constant 1.000000e+00 : f32
    %338 = vector.broadcast %cst_131 : f32 to vector<8x64xf32>
    %339 = arith.addf %338, %337 : vector<8x64xf32>
    %cst_132 = arith.constant 5.000000e-01 : f32
    %340 = vector.broadcast %cst_132 : f32 to vector<8x64xf32>
    %341 = arith.mulf %340, %339 : vector<8x64xf32>
    %342 = arith.mulf %329, %341 : vector<8x64xf32>
    %c1_133 = arith.constant 1 : index
    %c0_134 = arith.constant 0 : index
    %c0_135 = arith.constant 0 : index
    %343 = vector.load %arg11[%c1_133, %c0_134, %c0_135] : memref<2x64x32xf32, #tpu.memory_space<vmem>>, vector<1x64x32xf32>
    %344 = vector.shape_cast %343 : vector<1x64x32xf32> to vector<64x32xf32>
    %cst_136 = arith.constant dense<0.000000e+00> : vector<8x32xf32>
    %345 = tpu.matmul %342, %344, %cst_136 {dimension_numbers = #tpu.dot_dimension_numbers<[1], [0], [0], [1], [0, 0, 1, 1], [], []>} : vector<8x64xf32>, vector<64x32xf32>, vector<8x32xf32> -> vector<8x32xf32>
    %c1_137 = arith.constant 1 : index
    %c0_138 = arith.constant 0 : index
    %c0_139 = arith.constant 0 : index
    %346 = vector.load %arg12[%c1_137, %c0_138, %c0_139] : memref<2x1x32xf32, #tpu.memory_space<vmem>>, vector<1x1x32xf32>
    %347 = vector.shape_cast %346 : vector<1x1x32xf32> to vector<1x32xf32>
    %348 = vector.broadcast %347 : vector<1x32xf32> to vector<8x32xf32>
    %349 = arith.addf %345, %348 : vector<8x32xf32>
    %350 = arith.addf %322, %349 : vector<8x32xf32>
    %c1_140 = arith.constant 1 : index
    %c0_141 = arith.constant 0 : index
    %c0_142 = arith.constant 0 : index
    %351 = vector.load %arg13[%c1_140, %c0_141, %c0_142] : memref<2x2x32xf32, #tpu.memory_space<vmem>>, vector<1x2x32xf32>
    %352 = vector.shape_cast %351 : vector<1x2x32xf32> to vector<2x32xf32>
    %353 = vector.extract_strided_slice %352 {offsets = [0, 0], sizes = [1, 32], strides = [1, 1]} : vector<2x32xf32> to vector<1x32xf32>
    %354 = vector.extract_strided_slice %352 {offsets = [1, 0], sizes = [1, 32], strides = [1, 1]} : vector<2x32xf32> to vector<1x32xf32>
    %cst_143 = arith.constant dense<0.000000e+00> : vector<8xf32>
    %355 = vector.multi_reduction <add>, %350, %cst_143 [1] : vector<8x32xf32> to vector<8xf32>
    %356 = vector.shape_cast %355 : vector<8xf32> to vector<8x1xf32>
    %cst_144 = arith.constant 3.200000e+01 : f32
    %357 = vector.broadcast %cst_144 : f32 to vector<8x1xf32>
    %358 = arith.divf %356, %357 : vector<8x1xf32>
    %359 = vector.broadcast %358 : vector<8x1xf32> to vector<8x32xf32>
    %360 = arith.subf %350, %359 : vector<8x32xf32>
    %361 = arith.mulf %360, %360 : vector<8x32xf32>
    %cst_145 = arith.constant dense<0.000000e+00> : vector<8xf32>
    %362 = vector.multi_reduction <add>, %361, %cst_145 [1] : vector<8x32xf32> to vector<8xf32>
    %363 = vector.shape_cast %362 : vector<8xf32> to vector<8x1xf32>
    %cst_146 = arith.constant 3.200000e+01 : f32
    %364 = vector.broadcast %cst_146 : f32 to vector<8x1xf32>
    %365 = arith.divf %363, %364 : vector<8x1xf32>
    %366 = vector.broadcast %358 : vector<8x1xf32> to vector<8x32xf32>
    %367 = arith.subf %350, %366 : vector<8x32xf32>
    %cst_147 = arith.constant 9.99999996E-13 : f32
    %368 = vector.broadcast %cst_147 : f32 to vector<8x1xf32>
    %369 = arith.addf %365, %368 : vector<8x1xf32>
    %370 = math.rsqrt %369 : vector<8x1xf32>
    %371 = vector.broadcast %370 : vector<8x1xf32> to vector<8x32xf32>
    %372 = arith.mulf %367, %371 : vector<8x32xf32>
    %373 = vector.broadcast %353 : vector<1x32xf32> to vector<8x32xf32>
    %374 = arith.mulf %372, %373 : vector<8x32xf32>
    %375 = vector.broadcast %354 : vector<1x32xf32> to vector<8x32xf32>
    %376 = arith.addf %374, %375 : vector<8x32xf32>
    %377 = vector.extract_strided_slice %376 {offsets = [0, 0], sizes = [1, 32], strides = [1, 1]} : vector<8x32xf32> to vector<1x32xf32>
    %c0_148 = arith.constant 0 : index
    %c0_149 = arith.constant 0 : index
    %378 = vector.load %arg14[%c0_148, %c0_149] : memref<32x128xf32, #tpu.memory_space<vmem>>, vector<32x128xf32>
    %cst_150 = arith.constant dense<0.000000e+00> : vector<1x128xf32>
    %379 = tpu.matmul %377, %378, %cst_150 {dimension_numbers = #tpu.dot_dimension_numbers<[1], [0], [0], [1], [0, 0, 1, 1], [], []>} : vector<1x32xf32>, vector<32x128xf32>, vector<1x128xf32> -> vector<1x128xf32>
    %c0_151 = arith.constant 0 : index
    %c0_152 = arith.constant 0 : index
    %380 = vector.load %arg15[%c0_151, %c0_152] : memref<1x128xf32, #tpu.memory_space<vmem>>, vector<1x128xf32>
    %381 = arith.addf %379, %380 : vector<1x128xf32>
    %382 = arith.mulf %381, %381 : vector<1x128xf32>
    %cst_153 = arith.constant dense<0.000000e+00> : vector<1xf32>
    %383 = vector.multi_reduction <add>, %382, %cst_153 [1] : vector<1x128xf32> to vector<1xf32>
    %384 = vector.shape_cast %383 : vector<1xf32> to vector<1x1xf32>
    %385 = math.sqrt %384 : vector<1x1xf32>
    %cst_154 = arith.constant 9.99999996E-13 : f32
    %386 = vector.broadcast %cst_154 : f32 to vector<1x1xf32>
    %387 = arith.maximumf %385, %386 : vector<1x1xf32>
    %388 = vector.broadcast %387 : vector<1x1xf32> to vector<1x128xf32>
    %389 = arith.divf %381, %388 : vector<1x128xf32>
    %c0_155 = arith.constant 0 : index
    %c0_156 = arith.constant 0 : index
    %c0_157 = arith.constant 0 : index
    %390 = vector.load %arg16[%c0_155, %c0_156, %c0_157] : memref<1x1x128xf32, #tpu.memory_space<vmem>>, vector<1x1x128xf32>
    %391 = vector.shape_cast %390 : vector<1x1x128xf32> to vector<1x128xf32>
    %392 = vector.shape_cast %389 : vector<1x128xf32> to vector<1x1x128xf32>
    tpu.vector_store %arg16[%c0_155, %c0_156, %c0_157], %392 {strides = array<i32>} : memref<1x1x128xf32, #tpu.memory_space<vmem>>, vector<1x1x128xf32>,
    return
  }
  func.func @transform_0(%arg0: i32) -> (i32, i32, i32) {
    %c0_i32 = arith.constant 0 : i32
    %c0_i32_0 = arith.constant 0 : i32
    %c0_i32_1 = arith.constant 0 : i32
    return %arg0, %c0_i32, %c0_i32_0 : i32, i32, i32
  }
  func.func @transform_1(%arg0: i32) -> (i32, i32, i32) {
    %c0_i32 = arith.constant 0 : i32
    %c0_i32_0 = arith.constant 0 : i32
    %c0_i32_1 = arith.constant 0 : i32
    return %arg0, %c0_i32, %c0_i32_0 : i32, i32, i32
  }
  func.func @transform_2(%arg0: i32) -> (i32, i32) {
    %c0_i32 = arith.constant 0 : i32
    %c0_i32_0 = arith.constant 0 : i32
    %c0_i32_1 = arith.constant 0 : i32
    return %c0_i32, %c0_i32_0 : i32, i32
  }
  func.func @transform_3(%arg0: i32) -> (i32, i32, i32) {
    %c0_i32 = arith.constant 0 : i32
    %c0_i32_0 = arith.constant 0 : i32
    %c0_i32_1 = arith.constant 0 : i32
    %c0_i32_2 = arith.constant 0 : i32
    return %c0_i32, %c0_i32_0, %c0_i32_1 : i32, i32, i32
  }
  func.func @transform_4(%arg0: i32) -> (i32, i32, i32) {
    %c0_i32 = arith.constant 0 : i32
    %c0_i32_0 = arith.constant 0 : i32
    %c0_i32_1 = arith.constant 0 : i32
    %c0_i32_2 = arith.constant 0 : i32
    return %c0_i32, %c0_i32_0, %c0_i32_1 : i32, i32, i32
  }
  func.func @transform_5(%arg0: i32) -> (i32, i32, i32) {
    %c0_i32 = arith.constant 0 : i32
    %c0_i32_0 = arith.constant 0 : i32
    %c0_i32_1 = arith.constant 0 : i32
    %c0_i32_2 = arith.constant 0 : i32
    return %c0_i32, %c0_i32_0, %c0_i32_1 : i32, i32, i32
  }
  func.func @transform_6(%arg0: i32) -> (i32, i32, i32) {
    %c0_i32 = arith.constant 0 : i32
    %c0_i32_0 = arith.constant 0 : i32
    %c0_i32_1 = arith.constant 0 : i32
    %c0_i32_2 = arith.constant 0 : i32
    return %c0_i32, %c0_i32_0, %c0_i32_1 : i32, i32, i32
  }
  func.func @transform_7(%arg0: i32) -> (i32, i32, i32) {
    %c0_i32 = arith.constant 0 : i32
    %c0_i32_0 = arith.constant 0 : i32
    %c0_i32_1 = arith.constant 0 : i32
    %c0_i32_2 = arith.constant 0 : i32
    return %c0_i32, %c0_i32_0, %c0_i32_1 : i32, i32, i32
  }
  func.func @transform_8(%arg0: i32) -> (i32, i32, i32) {
    %c0_i32 = arith.constant 0 : i32
    %c0_i32_0 = arith.constant 0 : i32
    %c0_i32_1 = arith.constant 0 : i32
    %c0_i32_2 = arith.constant 0 : i32
    return %c0_i32, %c0_i32_0, %c0_i32_1 : i32, i32, i32
  }
  func.func @transform_9(%arg0: i32) -> (i32, i32, i32) {
    %c0_i32 = arith.constant 0 : i32
    %c0_i32_0 = arith.constant 0 : i32
    %c0_i32_1 = arith.constant 0 : i32
    %c0_i32_2 = arith.constant 0 : i32
    return %c0_i32, %c0_i32_0, %c0_i32_1 : i32, i32, i32
  }
  func.func @transform_10(%arg0: i32) -> (i32, i32, i32) {
    %c0_i32 = arith.constant 0 : i32
    %c0_i32_0 = arith.constant 0 : i32
    %c0_i32_1 = arith.constant 0 : i32
    %c0_i32_2 = arith.constant 0 : i32
    return %c0_i32, %c0_i32_0, %c0_i32_1 : i32, i32, i32
  }
  func.func @transform_11(%arg0: i32) -> (i32, i32, i32) {
    %c0_i32 = arith.constant 0 : i32
    %c0_i32_0 = arith.constant 0 : i32
    %c0_i32_1 = arith.constant 0 : i32
    %c0_i32_2 = arith.constant 0 : i32
    return %c0_i32, %c0_i32_0, %c0_i32_1 : i32, i32, i32
  }
  func.func @transform_12(%arg0: i32) -> (i32, i32, i32) {
    %c0_i32 = arith.constant 0 : i32
    %c0_i32_0 = arith.constant 0 : i32
    %c0_i32_1 = arith.constant 0 : i32
    %c0_i32_2 = arith.constant 0 : i32
    return %c0_i32, %c0_i32_0, %c0_i32_1 : i32, i32, i32
  }
  func.func @transform_13(%arg0: i32) -> (i32, i32) {
    %c0_i32 = arith.constant 0 : i32
    %c0_i32_0 = arith.constant 0 : i32
    %c0_i32_1 = arith.constant 0 : i32
    return %c0_i32, %c0_i32_0 : i32, i32
  }
  func.func @transform_14(%arg0: i32) -> (i32, i32) {
    %c0_i32 = arith.constant 0 : i32
    %c0_i32_0 = arith.constant 0 : i32
    %c0_i32_1 = arith.constant 0 : i32
    return %c0_i32, %c0_i32_0 : i32, i32
  }
  func.func @transform_15(%arg0: i32) -> (i32, i32, i32) {
    %c0_i32 = arith.constant 0 : i32
    %c0_i32_0 = arith.constant 0 : i32
    %c0_i32_1 = arith.constant 0 : i32
    return %arg0, %c0_i32, %c0_i32_0 : i32, i32, i32
  }
}

</mosaic_0001>

<bundles_post_ra>
// kernel: dual_tower_forward.1
= control target key start
LH: loop header
LB: loop body
LE: loop exit
PB: predicated region body
PF: predicated region fallthrough
CT: control target
= control target key end

     0   :  { %s3465_s18 = smov 0   ;;  %s3909_s0 = inlined_call_operand.vmem [shape: f32[4,8,32], index: 0, kind: input, shape index: {}]   ;;  %s3910_s1 = inlined_call_operand.vmem [shape: f32[4,1,8], index: 1, kind: input, shape index: {}]   ;;  %s3911_s2 = inlined_call_operand.vmem [shape: f32[2,32], index: 2, kind: input, shape index: {}]   ;;  %s3912_s3 = inlined_call_operand.vmem [shape: f32[2,32,96], index: 3, kind: input, shape index: {}]   ;;  %s3913_s4 = inlined_call_operand.vmem [shape: f32[2,1,96], index: 4, kind: input, shape index: {}]   ;;  %s3914_s5 = inlined_call_operand.vmem [shape: f32[2,32,32], index: 5, kind: input, shape index: {}]   ;;  %s3915_s6 = inlined_call_operand.vmem [shape: f32[2,1,32], index: 6, kind: input, shape index: {}]   ;;  %s3916_s7 = inlined_call_operand.vmem [shape: f32[2,2,32], index: 7, kind: input, shape index: {}]   ;;  %s3917_s8 = inlined_call_operand.vmem [shape: f32[2,32,64], index: 8, kind: input, shape index: {}]   ;;  %s3918_s9 = inlined_call_operand.vmem [shape: f32[2,1,64], index: 9, kind: input, shape index: {}]   ;;  %s3919_s10 = inlined_call_operand.vmem [shape: f32[2,64,32], index: 10, kind: input, shape index: {}]   ;;  %s3920_s11 = inlined_call_operand.vmem [shape: f32[2,1,32], index: 11, kind: input, shape index: {}]   ;;  %s3921_s12 = inlined_call_operand.vmem [shape: f32[2,2,32], index: 12, kind: input, shape index: {}]   ;;  %s3922_s13 = inlined_call_operand.vmem [shape: f32[32,128], index: 13, kind: input, shape index: {}]   ;;  %s3923_s14 = inlined_call_operand.vmem [shape: f32[1,128], index: 14, kind: input, shape index: {}]   ;;  %s3924_s15 = inlined_call_operand.vmem [shape: f32[4,1,128], index: 15, kind: output, shape index: {}]  }
   0x1 LB: > { %s2864_s19 = sadd.s32 4294967295, %s3366_s18   ;;  %p2868_p0 = scmp.ge.s32.totalorder %s3366_s18, 1  ;;  %s3366_s18 = sphi %s3465_s18, %s25_s18  }
   0x2   : > { %p444_p1 = scmp.lt.s32.totalorder %s3366_s18, 5 }
   0x4   : > { %p445_p2 = pnand %p2868_p0, %p444_p1 }
   0x5   : > { %p492_p3 = scmp.lt.s32.totalorder (!%p445_p2), %s2864_s19, 3  ;;  %vm504_vm0 = vcmask (!%p445_p2), 261120   ;;  %v532_v7 = vld [vmem:[%s3912_s3] sm:$0xff] (!%p445_p2)  ;;  %v533_v8 = vld [vmem:[%s3912_s3 + $0x8] sm:$0xff] (!%p445_p2)  ;;  %v534_v9 = vld [vmem:[%s3912_s3 + $0x10] sm:$0xff] (!%p445_p2)  ;;  %v3368_v10 = vmov (!%p445_p2), 0.0|0.0   ;;  %v519_v17 = vlaneseq (!%p445_p2) }
   0x6   : > { %448 = sbr.rel (%p445_p2) target bundleno = 6252 (0x186c), region = 80  ;;  %3219 = vmatprep.subr.bf16.mxu0 (!%p445_p2), %v3368_v10  ;;  %v3220_v11 = vpack.c.bf16 (!%p445_p2), %v533_v8, %v532_v7  ;;  %v535_v12 = vld [vmem:[%s3912_s3 + $0x18] sm:$0xff] (!%p445_p2)  ;;  %vm3369_vm1 = vmmov (!%p445_p2), 0   ;;  %v3370_v13 = vmov (!%p445_p2), 0.0   ;;  %v503_v21 = vld [vmem:[%s3911_s2] sm:$0x3] (!%p445_p2) }
   0x7   : > { %3032 = vmatprep.mubr.msk.f32.mxu0 (!%p445_p2), %vm3369_vm1, %v3370_v13  ;;  %3035 = vmatprep.subr.mxu1 (!%p445_p2), %v3370_v13  ;;  %v3223_v14 = vpack.c.bf16 (!%p445_p2), %v535_v12, %v534_v9  ;;  %v520_v19 = vshrl.u32 (!%p445_p2), %v519_v17, 7  ;;  %v2870_v29 = vld [vmem:[%s3913_s4] ss:$0 sm:$0xff] (!%p445_p2)  ;;  %s3372_s24 = smov (!%p445_p2), 96   ;;  %s3373_s25 = smov (!%p445_p2), 88   ;;  %vm619_vm2 = vcmask (!%p445_p2), 64512  }
   0x8   : > { %3037 = vmatprep.mubr.msk.f32.mxu1 (!%p445_p2), %vm3369_vm1, %v3370_v13  ;;  %3221 = vmatpush3.bf16.msra.mxu0 (!%p445_p2), %v3220_v11  ;;  %s3374_s26 = smov (!%p445_p2), 120   ;;  %s3375_s30 = smov (!%p445_p2), 80   ;;  %vm1303_vm3 = vcmask (!%p445_p2), 130048   ;;  %vm1305_vm4 = vcmask (!%p445_p2), 195584   ;;  %vm1524_vm5 = vcmask (!%p445_p2), 523264   ;;  %vm2793_vm6 = vcmask (!%p445_p2), 1040384  }
   0x9   : > { %3222 = vmatprep.subr.bf16.mxu0 (!%p445_p2), %v3368_v10  ;;  %v3501_v20 = vsub.s32 (!%p445_p2), 0, %v520_v19  ;;  %v3506_v22 = vsub.s32 (!%p445_p2), 1, %v520_v19  ;;  %s3376_s16 = smov (!%p445_p2), 112   ;;  %s3929_s17 = smov (!%p445_p2), 72  }
   0xa   : > { %s3927_s21 = smov (!%p445_p2), 48   ;;  %s3925_s22 = smov (!%p445_p2), 56  }
   0xb   : > { %v522_v23 = vrot.slane (!%p445_p2), %v503_v21, %v3501_v20  ;;  %v527_v26 = vrot.slane (!%p445_p2), %v503_v21, %v3506_v22  ;;  %s3926_s27 = smov (!%p445_p2), 40   ;;  %s3933_s28 = smov (!%p445_p2), 8  }
   0xc   : > { %3224 = vmatpush3.bf16.msra.mxu0 (!%p445_p2), %v3223_v14 }
   0xd   : > { %s3944_s19 = smov (!%p492_p3, %s2864_s19), 3  ;;  %3055 = vmatprep.subr.mxu0 %v3370_v13 }
   0xe   : > { %s2869_s20 = sshll.u32 %s3944_s19, 3  ;;  %s498_s29 = scalar_lea.vmem %s3910_s1, %s3944_s19 }
   0xf   : > { %s495_s23 = scalar_lea.vmem %s3909_s0, %s2869_s20  ;;  %v529_v35 = vld [vmem:[%s498_s29] sm:$0x1]  ;;  %s3930_s20 = smov 104  }
  0x10   : > { %v502_v0 = vld [vmem:[%s495_s23] sm:$0xff]  ;;  %s3928_s23 = smov 64   ;;  %v530_v36 = vsub.f32 1.0, %v529_v35 }
  0x11   : > { %v505_v1 = vsel %vm504_vm0, %v502_v0, 0.0 }
  0x12   : > { %506 = vadd.xlane.f32.xlu0 %v505_v1  ;;  %v531_v37 = vmul.f32 -1e+09, %v530_v36 }
  0x14   : > { %v3541_v38 = vrot.slane %v531_v37, %v3501_v20 }
  0x9f   : > { %v507_v2 = vpop.xlane.xlu0 %506 }
  0xa0   : > { %v509_v3 = vmul.f32 0.03125, %v507_v2 }
  0xa2   : > { %v510_v4 = vsub.f32 %v502_v0, %v509_v3 }
  0xa4   : > { %v511_v5 = vmul.f32 %v510_v4, %v510_v4 }
  0xa6   : > { %v512_v6 = vsel %vm504_vm0, %v511_v5, 0.0 }
  0xa7   : > { %513 = vadd.xlane.f32.xlu0 %v512_v6 }
 0x134   : > { %v514_v15 = vpop.xlane.xlu0 %513 }
 0x135   : > { %v515_v16 = vmul.f32 0.03125, %v514_v15 }
 0x137   : > { %v516_v18 = vadd.f32 1e-12, %v515_v16 }
 0x139   : > { %3310 = vrsqrt.f32 %v516_v18 }
 0x143   : > { %v3311_v24 = vpop.eup %3310 }
 0x144   : > { %v518_v25 = vmul.f32 %v3311_v24, %v510_v4 }
 0x146   : > { %v523_v27 = vmul.f32 %v522_v23, %v518_v25 }
 0x148   : > { %v3510_v28 = vadd.f32 %v527_v26, %v523_v27 }
 0x14a   : > { %3033 = vmatmul.mubr.msk.f32.vlgmr.msra.gmra.mrb[0].mxu0 %vm504_vm0, %v3510_v28 }
 0x14b   : > { %3057 = vmatprep.mubr.msk.f32.mxu0 %vm3369_vm1, %v3370_v13 }
 0x21d   : > { %v612_v30 = vpop.f32.mrb[0].mxu0 }
 0x21e   : > { %v3519_v31 = vadd.f32 %v2870_v29, %v612_v30  ;;  %v3034_v32 = vpop.f32.mrb[1].mxu0 }
 0x220   : > { %713 = vrot.lane.b32.xlu0 %v3519_v31, %s3928_s23  ;;  %617 = vrot.lane.b32.xlu1 %v3519_v31, %s3372_s24  ;;  %s3931_s23 = smov 24  }
 0x224   : > { %791 = vrot.lane.b32.xlu0 %v3519_v31, %s3373_s25 }
 0x228   : > { %789 = vrot.lane.b32.xlu0 %v3519_v31, %s3374_s26 }
 0x292   : > { %v618_v33 = vpop.permute.xlu1 %617  ;;  %v714_v34 = vpop.permute.xlu0 %713 }
 0x293   : > { %3036 = vmatpush3.xpose.msk.msra.mxu1 %vm619_vm2, %v618_v33 }
 0x294   : > { %3040 = vmatprep.subr.mxu1 %v3370_v13 }
 0x296   : > { %3038 = vmatmul.mubr.msk.f32.vlgmr.msra.gmra.mrb[0].mxu1 %vm619_vm2, %v3519_v31  ;;  %v792_v50 = vpop.permute.xlu0 %791 }
 0x297   : > { %3041 = vmatpush3.msra.mxu1 %v714_v34  ;;  %3042 = vmatprep.mubr.msk.f32.mxu1 %vm3369_vm1, %v3370_v13 }
 0x298   : > { %3045 = vmatprep.subr.mxu1 %v3370_v13 }
 0x29a   : > { %v790_v51 = vpop.permute.xlu0 %789 }
 0x369   : > { %v690_v39 = vpop.f32.mrb[0].mxu1 }
 0x36a   : > { %v694_v40 = vmul.f32 0.35355338, %v690_v39  ;;  %v3039_v41 = vpop.f32.mrb[1].mxu1 }
 0x36c   : > { %v701_v42 = vadd.f32 %v3541_v38, %v694_v40 }
 0x36e   : > { %v702_v43 = vsel %vm619_vm2, %v701_v42, -inf }
 0x36f   : > { %703 = vmax.xlane.f32.xlu1 %v702_v43 }
 0x380   : > { %958 = vrot.lane.b32.xlu1 %v3519_v31, %s3375_s30 }
 0x3fc   : > { %v704_v44 = vpop.xlane.xlu1 %703 }
 0x3fd   : > { %v705_v45 = vsub.f32 %v701_v42, %v704_v44  ;;  %v1307_v44 = vld [vmem:[%s3914_s5] sm:$0xff] }
 0x3ff   : > { %v706_v46 = vmul.f32 1.442695, %v705_v45  ;;  %v1308_v45 = vld [vmem:[%s3914_s5 + $0x8] sm:$0xff] }
 0x400   : > { %v959_v47 = vpop.permute.xlu1 %958 }
 0x401   : > { %3312 = vpow2.f32 %v706_v46  ;;  %3056 = vmatpush3.xpose.msk.msra.mxu0 %vm619_vm2, %v959_v47  ;;  %v3226_v46 = vpack.c.bf16 %v1308_v45, %v1307_v44  ;;  %v1309_v47 = vld [vmem:[%s3914_s5 + $0x10] sm:$0xff] }
 0x402   : > { %3065 = vmatprep.subr.mxu0 %v3370_v13 }
 0x40b   : > { %v3313_v48 = vpop.eup %3312 }
 0x40c   : > { %v708_v49 = vsel %vm619_vm2, %v3313_v48, 0.0 }
 0x40d   : > { %709 = vadd.xlane.f32.xlu0 %v708_v49 }
 0x423   : > { %956 = vrot.lane.b32.xlu0 %v3519_v31, %s3376_s16 }
 0x427   : > { %1125 = vrot.lane.b32.xlu0 %v3519_v31, %s3929_s17 }
 0x42b   : > { %1123 = vrot.lane.b32.xlu0 %v3519_v31, %s3930_s20 }
 0x49a   : > { %v710_v52 = vpop.xlane.xlu0 %709 }
 0x49b   : > { %3314 = vrcp.f32 %v710_v52 }
 0x49e   : > { %v957_v53 = vpop.permute.xlu0 %956 }
 0x49f   : > { %3058 = vmatmul.mubr.msk.f32.vlgmr.msra.gmra.mrb[2].mxu0 %vm619_vm2, %v957_v53 }
 0x4a0   : > { %3067 = vmatprep.mubr.msk.f32.mxu0 %vm3369_vm1, %v3370_v13 }
 0x4a2   : > { %v1126_v54 = vpop.permute.xlu0 %1125 }
 0x4a3   : > { %3066 = vmatpush3.xpose.msk.msra.mxu0 %vm619_vm2, %v1126_v54 }
 0x4a4   : > { %3225 = vmatprep.subr.bf16.mxu0 %v3368_v10 }
 0x4a5   : > { %v3315_v55 = vpop.eup %3314 }
 0x4a6   : > { %v712_v56 = vmul.f32 %v3315_v55, %v3313_v48  ;;  %v1124_v57 = vpop.permute.xlu0 %1123  ;;  %v1310_v48 = vld [vmem:[%s3914_s5 + $0x18] sm:$0xff] }
 0x4a7   : > { %3068 = vmatmul.mubr.msk.f32.vlgmr.msra.gmra.mrb[4].mxu0 %vm619_vm2, %v1124_v57  ;;  %v3229_v49 = vpack.c.bf16 %v1310_v48, %v1309_v47 }
 0x4a8   : > { %3043 = vmatmul.mubr.msk.f32.vlgmr.msra.gmra.mrb[2].mxu1 %vm619_vm2, %v712_v56  ;;  %3083 = vmatprep.mubr.msk.f32.mxu0 %vm3369_vm1, %v3370_v13 }
 0x4a9   : > { %3046 = vmatpush3.xpose.msk.msra.mxu1 %vm619_vm2, %v792_v50  ;;  %3047 = vmatprep.mubr.msk.f32.mxu1 %vm3369_vm1, %v3370_v13 }
 0x4aa   : > { %3050 = vmatprep.subr.mxu1 %v3370_v13  ;;  %3227 = vmatpush3.bf16.msra.mxu0 %v3226_v46 }
 0x4ab   : > { %3228 = vmatprep.subr.bf16.mxu0 %v3368_v10 }
 0x4ac   : > { %3048 = vmatmul.mubr.msk.f32.vlgmr.msra.gmra.mrb[4].mxu1 %vm619_vm2, %v790_v51 }
 0x4ad   : > { %3052 = vmatprep.mubr.msk.f32.mxu1 %vm3369_vm1, %v3370_v13 }
 0x4ae   : > { %3230 = vmatpush3.bf16.msra.mxu0 %v3229_v49 }
 0x4af   : > { %3237 = vmatprep.subr.bf16.mxu0 %v3368_v10 }
 0x572   : > { %v1030_v58 = vpop.f32.mrb[2].mxu0 }
 0x573   : > { %v1034_v59 = vmul.f32 0.35355338, %v1030_v58  ;;  %v3059_v60 = vpop.f32.mrb[3].mxu0 }
 0x575   : > { %v1035_v61 = vadd.f32 %v1034_v59, %v3541_v38 }
 0x577   : > { %v1036_v62 = vsel %vm619_vm2, %v1035_v61, -inf }
 0x578   : > { %1037 = vmax.xlane.f32.xlu1 %v1036_v62  ;;  %v2884_v62 = vld [vmem:[%s3915_s6] ss:$0 sm:$0xff] }
 0x57a   : > { %v1197_v63 = vpop.f32.mrb[4].mxu0 }
 0x57b   : > { %v3574_v0 = vpop.f32.mrb[2].mxu1  ;;  %v3069_v1 = vpop.f32.mrb[5].mxu0  ;;  %v1201_v4 = vmul.f32 0.35355338, %v1197_v63 }
 0x57c   : > { %v3044_v2 = vpop.f32.mrb[3].mxu1 }
 0x57d   : > { %v1202_v9 = vadd.f32 %v1201_v4, %v3541_v38 }
 0x57f   : > { %v863_v3 = vpop.f32.mrb[4].mxu1  ;;  %v1203_v11 = vsel %vm619_vm2, %v1202_v9, -inf }
 0x580   : > { %v867_v5 = vmul.f32 0.35355338, %v863_v3  ;;  %v3049_v6 = vpop.f32.mrb[5].mxu1 }
 0x582   : > { %v868_v7 = vadd.f32 %v867_v5, %v3541_v38 }
 0x584   : > { %v869_v8 = vsel %vm619_vm2, %v868_v7, -inf }
 0x585   : > { %870 = vmax.xlane.f32.xlu0 %v869_v8 }
 0x589   : > { %1204 = vmax.xlane.f32.xlu0 %v1203_v11  ;;  %v1417_v11 = vld [vmem:[%s3917_s8 + $0x8] sm:$0xff] }
 0x605   : > { %v1038_v12 = vpop.xlane.xlu1 %1037 }
 0x606   : > { %v1039_v14 = vsub.f32 %v1035_v61, %v1038_v12 }
 0x608   : > { %v1040_v15 = vmul.f32 1.442695, %v1039_v14  ;;  %v1419_v14 = vld [vmem:[%s3917_s8 + $0x18] sm:$0xff] }
 0x60a   : > { %3316 = vpow2.f32 %v1040_v15 }
 0x612   : > { %v871_v16 = vpop.xlane.xlu0 %870 }
 0x613   : > { %v872_v17 = vsub.f32 %v868_v7, %v871_v16 }
 0x614   : > { %v3317_v18 = vpop.eup %3316 }
 0x615   : > { %v873_v19 = vmul.f32 1.442695, %v872_v17  ;;  %v1042_v21 = vsel %vm619_vm2, %v3317_v18, 0.0 }
 0x616   : > { %1043 = vadd.xlane.f32.xlu0 %v1042_v21  ;;  %v1205_v23 = vpop.xlane.xlu0 %1204 }
 0x617   : > { %3318 = vpow2.f32 %v873_v19  ;;  %v1206_v24 = vsub.f32 %v1202_v9, %v1205_v23  ;;  %v1416_v9 = vld [vmem:[%s3917_s8] sm:$0xff] }
 0x618   : > { %v3232_v12 = vpack.c.bf16 %v1417_v11, %v1416_v9  ;;  %v1392_v19 = vld [vmem:[%s3916_s7] sm:$0x3] }
 0x619   : > { %v1207_v25 = vmul.f32 1.442695, %v1206_v24  ;;  %v1409_v21 = vrot.slane %v1392_v19, %v3501_v20 }
 0x61b   : > { %3320 = vpow2.f32 %v1207_v25  ;;  %v1414_v25 = vrot.slane %v1392_v19, %v3506_v22  ;;  %v2895_v19 = vld [vmem:[%s3913_s4 + $0x1] ss:$0 sm:$0xff] }
 0x621   : > { %v3319_v26 = vpop.eup %3318 }
 0x622   : > { %v875_v27 = vsel %vm619_vm2, %v3319_v26, 0.0 }
 0x623   : > { %876 = vadd.xlane.f32.xlu0 %v875_v27 }
 0x625   : > { %v3321_v29 = vpop.eup %3320 }
 0x626   : > { %v1209_v30 = vsel %vm619_vm2, %v3321_v29, 0.0 }
 0x627   : > { %1210 = vadd.xlane.f32.xlu1 %v1209_v30  ;;  %v1510_v30 = vld [vmem:[%s3919_s10 + $0x8] sm:$0xff] }
 0x638   : > { %1047 = vrot.lane.b32.xlu1 %v3519_v31, %s3927_s21  ;;  %s501_s21 = scalar_lea.vmem %s3924_s15, %s3944_s19 }
 0x639   : > { %880 = vrot.lane.b32.xlu0 %v3519_v31, %s3925_s22  ;;  %s3932_s22 = smov 16  }
 0x63c   : > { %1214 = vrot.lane.b32.xlu1 %v3519_v31, %s3926_s27 }
 0x6a3   : > { %v1044_v32 = vpop.xlane.xlu0 %1043 }
 0x6b0   : > { %v877_v33 = vpop.xlane.xlu0 %876 }
 0x6b1   : > { %3322 = vrcp.f32 %v877_v33  ;;  %v1511_v33 = vld [vmem:[%s3919_s10 + $0x10] sm:$0xff] }
 0x6b2   : > { %3324 = vrcp.f32 %v1044_v32 }
 0x6b4   : > { %v1211_v34 = vpop.xlane.xlu1 %1210  ;;  %v881_v35 = vpop.permute.xlu0 %880 }
 0x6b5   : > { %3051 = vmatpush3.msra.mxu1 %v881_v35  ;;  %3326 = vrcp.f32 %v1211_v34  ;;  %v1512_v34 = vld [vmem:[%s3919_s10 + $0x18] sm:$0xff] }
 0x6b6   : > { %3060 = vmatprep.subr.mxu1 %v3370_v13  ;;  %v3241_v35 = vpack.c.bf16 %v1512_v34, %v1511_v33 }
 0x6b8   : > { %v1048_v39 = vpop.permute.xlu1 %1047 }
 0x6bb   : > { %v3323_v36 = vpop.eup %3322 }
 0x6bc   : > { %v879_v37 = vmul.f32 %v3323_v36, %v3319_v26  ;;  %v3325_v40 = vpop.eup %3324  ;;  %v1215_v42 = vpop.permute.xlu1 %1214  ;;  %v1513_v36 = vld [vmem:[%s3919_s10 + $0x20] sm:$0xff] }
 0x6bd   : > { %v1046_v31 = vmul.f32 %v3325_v40, %v3317_v18  ;;  %v1515_v40 = vld [vmem:[%s3919_s10 + $0x30] sm:$0xff] }
 0x6be   : > { %3053 = vmatmul.mubr.msk.f32.vlgmr.msra.gmra.mrb[6].mxu1 %vm619_vm2, %v879_v37  ;;  %v1514_v37 = vld [vmem:[%s3919_s10 + $0x28] sm:$0xff] }
 0x6bf   : > { %3061 = vmatpush3.msra.mxu1 %v1048_v39  ;;  %3062 = vmatprep.mubr.msk.f32.mxu1 %vm3369_vm1, %v3370_v13  ;;  %v3327_v41 = vpop.eup %3326  ;;  %v3244_v39 = vpack.c.bf16 %v1514_v37, %v1513_v36 }
 0x6c0   : > { %3070 = vmatprep.subr.mxu1 %v3370_v13  ;;  %v1213_v43 = vmul.f32 %v3327_v41, %v3321_v29  ;;  %v1509_v29 = vld [vmem:[%s3919_s10] sm:$0xff] }
 0x6c1   : > { %v3238_v32 = vpack.c.bf16 %v1510_v30, %v1509_v29 }
 0x6c2   : > { %3063 = vmatmul.mubr.msk.f32.vlgmr.msra.gmra.mrb[8].mxu1 %vm619_vm2, %v1046_v31  ;;  %v1516_v31 = vld [vmem:[%s3919_s10 + $0x38] sm:$0xff] }
 0x6c3   : > { %3071 = vmatpush3.msra.mxu1 %v1215_v42  ;;  %3072 = vmatprep.mubr.msk.f32.mxu1 %vm3369_vm1, %v3370_v13  ;;  %v3247_v41 = vpack.c.bf16 %v1516_v31, %v1515_v40  ;;  %v2886_v42 = vld [vmem:[%s3918_s9] ss:$0 sm:$0xff] }
 0x6c4   : > { %3231 = vmatprep.subr.bf16.mxu1 %v3368_v10 }
 0x6c6   : > { %3073 = vmatmul.mubr.msk.f32.vlgmr.msra.gmra.mrb[10].mxu1 %vm619_vm2, %v1213_v43 }
 0x6c7   : > { %3094 = vmatprep.mubr.msk.f32.mxu1 %vm3369_vm1, %v3370_v13  ;;  %3233 = vmatpush3.bf16.msra.mxu1 %v3232_v12  ;;  %v1599_v12 = vld [vmem:[%s3921_s12] sm:$0x3] }
 0x6c8   : > { %3234 = vmatprep.subr.bf16.mxu1 %v3368_v10 }
 0x791   : > { %v952_v50 = vpop.f32.mrb[6].mxu1 }
 0x792   : > { %1291 = vrot.lane.b32.xlu1 %v952_v50, %s3933_s28  ;;  %v3054_v51 = vpop.f32.mrb[7].mxu1  ;;  %s3934_s28 = smov 104  }
 0x795   : > { %v1119_v52 = vpop.f32.mrb[8].mxu1 }
 0x796   : > { %1295 = vrot.lane.b32.xlu0 %v1119_v52, %s3932_s22  ;;  %v3064_v53 = vpop.f32.mrb[9].mxu1  ;;  %s3935_s22 = smov 72  }
 0x799   : > { %v1286_v54 = vpop.f32.mrb[10].mxu1 }
 0x79a   : > { %1299 = vrot.lane.b32.xlu1 %v1286_v54, %s3931_s23  ;;  %v3074_v55 = vpop.f32.mrb[11].mxu1 }
 0x79b   : > { %v2888_v55 = vld [vmem:[%s3920_s11] ss:$0 sm:$0xff] }
 0x804   : > { %v1292_v56 = vpop.permute.xlu1 %1291 }
 0x805   : > { %v1302_v58 = vsel %vm619_vm2, %v3574_v0, %v1292_v56 }
 0x808   : > { %v1296_v57 = vpop.permute.xlu0 %1295 }
 0x809   : > { %v1304_v59 = vsel %vm1303_vm3, %v1302_v58, %v1296_v57 }
 0x80c   : > { %v1300_v60 = vpop.permute.xlu1 %1299 }
 0x80d   : > { %v1306_v61 = vsel %vm1305_vm4, %v1304_v59, %v1300_v60 }
 0x80e   : > { %3084 = vmatmul.mubr.msk.f32.vlgmr.msra.gmra.mrb[6].mxu0 %vm504_vm0, %v1306_v61 }
 0x80f   : > { %3113 = vmatprep.mubr.msk.f32.mxu0 %vm3369_vm1, %v3370_v13  ;;  %3239 = vmatpush3.bf16.msra.mxu0 %v3238_v32 }
 0x810   : > { %3240 = vmatprep.subr.bf16.mxu0 %v3368_v10 }
 0x813   : > { %3242 = vmatpush3.bf16.msra.mxu0 %v3241_v35 }
 0x814   : > { %3243 = vmatprep.subr.bf16.mxu0 %v3368_v10 }
 0x817   : > { %3245 = vmatpush3.bf16.msra.mxu0 %v3244_v39 }
 0x818   : > { %3246 = vmatprep.subr.bf16.mxu0 %v3368_v10 }
 0x81b   : > { %3248 = vmatpush3.bf16.msra.mxu0 %v3247_v41 }
 0x81c   : > { %3137 = vmatprep.subr.mxu0 %v3370_v13 }
 0x8e1   : > { %v1387_v63 = vpop.f32.mrb[6].mxu0 }
 0x8e2   : > { %v1388_v1 = vadd.f32 %v2884_v62, %v1387_v63  ;;  %v3085_v2 = vpop.f32.mrb[7].mxu0 }
 0x8e4   : > { %v1391_v3 = vadd.f32 %v1388_v1, %v3510_v28  ;;  %v1418_v28 = vld [vmem:[%s3917_s8 + $0x10] sm:$0xff] }
 0x8e5   : > { %v3235_v15 = vpack.c.bf16 %v1419_v14, %v1418_v28  ;;  %v1616_v28 = vrot.slane %v1599_v12, %v3501_v20 }
 0x8e6   : > { %v1393_v0 = vsel %vm504_vm0, %v1391_v3, 0.0 }
 0x8e7   : > { %1394 = vadd.xlane.f32.xlu0 %v1393_v0  ;;  %3236 = vmatpush3.bf16.msra.mxu1 %v3235_v15  ;;  %v2891_v0 = vld [vmem:[%s3912_s3 + $0x28] sm:$0xff] }
 0x8e8   : > { %3249 = vmatprep.subr.bf16.mxu1 %v3368_v10 }
 0x974   : > { %v1395_v4 = vpop.xlane.xlu0 %1394 }
 0x975   : > { %v1396_v5 = vmul.f32 0.03125, %v1395_v4 }
 0x977   : > { %v1397_v6 = vsub.f32 %v1391_v3, %v1396_v5  ;;  %v2890_v3 = vld [vmem:[%s3912_s3 + $0x20] sm:$0xff]  ;;  %v2892_v5 = vld [vmem:[%s3912_s3 + $0x30] sm:$0xff] }
 0x978   : > { %v3250_v4 = vpack.c.bf16 %v2891_v0, %v2890_v3 }
 0x979   : > { %v1398_v7 = vmul.f32 %v1397_v6, %v1397_v6 }
 0x97b   : > { %v1399_v8 = vsel %vm504_vm0, %v1398_v7, 0.0 }
 0x97c   : > { %1400 = vadd.xlane.f32.xlu1 %v1399_v8 }
 0xa09   : > { %v1401_v16 = vpop.xlane.xlu1 %1400 }
 0xa0a   : > { %v1402_v17 = vmul.f32 0.03125, %v1401_v16  ;;  %v1621_v16 = vrot.slane %v1599_v12, %v3506_v22 }
 0xa0c   : > { %v1403_v18 = vadd.f32 1e-12, %v1402_v17 }
 0xa0e   : > { %3328 = vrsqrt.f32 %v1403_v18 }
 0xa18   : > { %v3329_v23 = vpop.eup %3328 }
 0xa19   : > { %v1405_v24 = vmul.f32 %v3329_v23, %v1397_v6  ;;  %v2893_v6 = vld [vmem:[%s3912_s3 + $0x38] sm:$0xff] }
 0xa1a   : > { %v3253_v7 = vpack.c.bf16 %v2893_v6, %v2892_v5 }
 0xa1b   : > { %v1410_v26 = vmul.f32 %v1409_v21, %v1405_v24 }
 0xa1d   : > { %v1415_v27 = vadd.f32 %v1414_v25, %v1410_v26 }
 0xa1f   : > { %3095 = vmatmul.mubr.msk.f32.vlgmr.msra.gmra.mrb[12].mxu1 %vm504_vm0, %v1415_v27 }
 0xa20   : > { %3124 = vmatprep.mubr.msk.f32.mxu1 %vm3369_vm1, %v3370_v13  ;;  %3251 = vmatpush3.bf16.msra.mxu1 %v3250_v4 }
 0xa21   : > { %3252 = vmatprep.subr.bf16.mxu1 %v3368_v10 }
 0xa24   : > { %3254 = vmatpush3.bf16.msra.mxu1 %v3253_v7 }
 0xa25   : > { %3127 = vmatprep.subr.mxu1 %v3370_v13 }
 0xaf2   : > { %v1496_v43 = vpop.f32.mrb[12].mxu1 }
 0xaf3   : > { %v1497_v44 = vadd.f32 %v2886_v42, %v1496_v43  ;;  %v3096_v45 = vpop.f32.mrb[13].mxu1 }
 0xaf5   : > { %v1500_v46 = vmul.f32 %v1497_v44, %v1497_v44 }
 0xaf7   : > { %v1501_v47 = vmul.f32 %v1500_v46, %v1497_v44 }
 0xaf9   : > { %v1502_v48 = vmul.f32 0.044715, %v1501_v47 }
 0xafb   : > { %v1503_v49 = vadd.f32 %v1502_v48, %v1497_v44 }
 0xafd   : > { %v1504_v50 = vmul.f32 0.7978846, %v1503_v49 }
 0xaff   : > { %3330 = vtanh.f32 %v1504_v50 }
 0xb09   : > { %v3331_v51 = vpop.eup %3330 }
 0xb0a   : > { %v1506_v52 = vadd.f32 1.0, %v3331_v51 }
 0xb0c   : > { %v1507_v53 = vmul.f32 0.5, %v1506_v52 }
 0xb0e   : > { %v1508_v54 = vmul.f32 %v1507_v53, %v1497_v44 }
 0xb10   : > { %3114 = vmatmul.mubr.msk.f32.vlgmr.msra.gmra.mrb[8].mxu0 %vm1524_vm5, %v1508_v54 }
 0xb11   : > { %3139 = vmatprep.mubr.msk.f32.mxu0 %vm3369_vm1, %v3370_v13 }
 0xbe3   : > { %v1594_v56 = vpop.f32.mrb[8].mxu0 }
 0xbe4   : > { %v1595_v57 = vadd.f32 %v2888_v55, %v1594_v56  ;;  %v3115_v58 = vpop.f32.mrb[9].mxu0 }
 0xbe6   : > { %v1598_v59 = vadd.f32 %v1595_v57, %v1415_v27 }
 0xbe8   : > { %v1600_v60 = vsel %vm504_vm0, %v1598_v59, 0.0 }
 0xbe9   : > { %1601 = vadd.xlane.f32.xlu0 %v1600_v60 }
 0xc76   : > { %v1602_v61 = vpop.xlane.xlu0 %1601 }
 0xc77   : > { %v1603_v62 = vmul.f32 0.03125, %v1602_v61 }
 0xc79   : > { %v1604_v63 = vsub.f32 %v1598_v59, %v1603_v62 }
 0xc7b   : > { %v1605_v1 = vmul.f32 %v1604_v63, %v1604_v63 }
 0xc7d   : > { %v1606_v2 = vsel %vm504_vm0, %v1605_v1, 0.0 }
 0xc7e   : > { %1607 = vadd.xlane.f32.xlu0 %v1606_v2 }
 0xd0b   : > { %v1608_v8 = vpop.xlane.xlu0 %1607 }
 0xd0c   : > { %v1609_v9 = vmul.f32 0.03125, %v1608_v8 }
 0xd0e   : > { %v1610_v11 = vadd.f32 1e-12, %v1609_v9 }
 0xd10   : > { %3332 = vrsqrt.f32 %v1610_v11 }
 0xd1a   : > { %v3333_v14 = vpop.eup %3332 }
 0xd1b   : > { %v1612_v15 = vmul.f32 %v3333_v14, %v1604_v63 }
 0xd1d   : > { %v1617_v17 = vmul.f32 %v1616_v28, %v1612_v15 }
 0xd1f   : > { %v3711_v18 = vadd.f32 %v1621_v16, %v1617_v17 }
 0xd21   : > { %3125 = vmatmul.mubr.msk.f32.vlgmr.msra.gmra.mrb[14].mxu1 %vm504_vm0, %v3711_v18 }
 0xd22   : > { %3129 = vmatprep.mubr.msk.f32.mxu1 %vm3369_vm1, %v3370_v13 }
 0xdf4   : > { %v1705_v21 = vpop.f32.mrb[14].mxu1 }
 0xdf5   : > { %v3720_v23 = vadd.f32 %v2895_v19, %v1705_v21  ;;  %v3126_v24 = vpop.f32.mrb[15].mxu1 }
 0xdf7   : > { %1877 = vrot.lane.b32.xlu1 %v3720_v23, %s3373_s25  ;;  %1710 = vrot.lane.b32.xlu0 %v3720_v23, %s3372_s24  ;;  %s3936_s24 = smov 64   ;;  %s3937_s25 = smov 48  }
 0xdfb   : > { %1875 = vrot.lane.b32.xlu1 %v3720_v23, %s3374_s26  ;;  %2042 = vrot.lane.b32.xlu0 %v3720_v23, %s3376_s16  ;;  %s3938_s26 = smov 40  }
 0xdff   : > { %2044 = vrot.lane.b32.xlu1 %v3720_v23, %s3375_s30  ;;  %2209 = vrot.lane.b32.xlu0 %v3720_v23, %s3934_s28  ;;  %s3939_s30 = smov 56  }
 0xe03   : > { %2211 = vrot.lane.b32.xlu1 %v3720_v23, %s3935_s22  ;;  %s3940_s22 = smov 8  }
 0xe69   : > { %v1878_v25 = vpop.permute.xlu1 %1877  ;;  %v1711_v26 = vpop.permute.xlu0 %1710 }
 0xe6a   : > { %3128 = vmatpush3.xpose.msk.msra.mxu1 %vm619_vm2, %v1711_v26  ;;  %3138 = vmatpush3.xpose.msk.msra.mxu0 %vm619_vm2, %v1878_v25 }
 0xe6b   : > { %3147 = vmatprep.subr.mxu0 %v3370_v13  ;;  %3132 = vmatprep.subr.mxu1 %v3370_v13 }
 0xe6d   : > { %v1876_v27 = vpop.permute.xlu1 %1875  ;;  %3130 = vmatmul.mubr.msk.f32.vlgmr.msra.gmra.mrb[16].mxu1 %vm619_vm2, %v3720_v23  ;;  %v2043_v30 = vpop.permute.xlu0 %2042 }
 0xe6e   : > { %3140 = vmatmul.mubr.msk.f32.vlgmr.msra.gmra.mrb[10].mxu0 %vm619_vm2, %v1876_v27  ;;  %3134 = vmatprep.mubr.msk.f32.mxu1 %vm3369_vm1, %v3370_v13 }
 0xe6f   : > { %3149 = vmatprep.mubr.msk.f32.mxu0 %vm3369_vm1, %v3370_v13 }
 0xe71   : > { %v2045_v29 = vpop.permute.xlu1 %2044  ;;  %v2210_v33 = vpop.permute.xlu0 %2209 }
 0xe72   : > { %3148 = vmatpush3.xpose.msk.msra.mxu0 %vm619_vm2, %v2045_v29 }
 0xe73   : > { %3157 = vmatprep.subr.mxu0 %v3370_v13 }
 0xe75   : > { %v2212_v32 = vpop.permute.xlu1 %2211  ;;  %3150 = vmatmul.mubr.msk.f32.vlgmr.msra.gmra.mrb[12].mxu0 %vm619_vm2, %v2043_v30  ;;  %v2909_v30 = vld [vmem:[%s3914_s5 + $0x20] sm:$0xff] }
 0xe76   : > { %3158 = vmatpush3.xpose.msk.msra.mxu0 %vm619_vm2, %v2212_v32  ;;  %3159 = vmatprep.mubr.msk.f32.mxu0 %vm3369_vm1, %v3370_v13  ;;  %v2910_v32 = vld [vmem:[%s3914_s5 + $0x28] sm:$0xff] }
 0xe77   : > { %3255 = vmatprep.subr.bf16.mxu0 %v3368_v10 }
 0xe79   : > { %3160 = vmatmul.mubr.msk.f32.vlgmr.msra.gmra.mrb[14].mxu0 %vm619_vm2, %v2210_v33  ;;  %v3256_v33 = vpack.c.bf16 %v2910_v32, %v2909_v30 }
 0xe7a   : > { %3175 = vmatprep.mubr.msk.f32.mxu0 %vm3369_vm1, %v3370_v13 }
 0xe7b   : > { %3257 = vmatpush3.bf16.msra.mxu0 %v3256_v33 }
 0xe7c   : > { %3258 = vmatprep.subr.bf16.mxu0 %v3368_v10 }
 0xf40   : > { %v1782_v34 = vpop.f32.mrb[16].mxu1 }
 0xf41   : > { %v1786_v35 = vmul.f32 0.35355338, %v1782_v34  ;;  %v3131_v36 = vpop.f32.mrb[17].mxu1  ;;  %v1949_v37 = vpop.f32.mrb[10].mxu0  ;;  %v2911_v34 = vld [vmem:[%s3914_s5 + $0x30] sm:$0xff] }
 0xf42   : > { %v1953_v39 = vmul.f32 0.35355338, %v1949_v37  ;;  %v3141_v40 = vpop.f32.mrb[11].mxu0 }
 0xf43   : > { %v1787_v31 = vadd.f32 %v1786_v35, %v3541_v38  ;;  %v2912_v35 = vld [vmem:[%s3914_s5 + $0x38] sm:$0xff] }
 0xf44   : > { %v1954_v41 = vadd.f32 %v1953_v39, %v3541_v38  ;;  %v3259_v36 = vpack.c.bf16 %v2912_v35, %v2911_v34 }
 0xf45   : > { %v1788_v42 = vsel %vm619_vm2, %v1787_v31, -inf }
 0xf46   : > { %1789 = vmax.xlane.f32.xlu1 %v1788_v42  ;;  %v1955_v43 = vsel %vm619_vm2, %v1954_v41, -inf  ;;  %3260 = vmatpush3.bf16.msra.mxu0 %v3259_v36 }
 0xf47   : > { %1956 = vmax.xlane.f32.xlu0 %v1955_v43  ;;  %3267 = vmatprep.subr.bf16.mxu0 %v3368_v10 }
 0xf48   : > { %v2116_v44 = vpop.f32.mrb[12].mxu0 }
 0xf49   : > { %v2120_v45 = vmul.f32 0.35355338, %v2116_v44  ;;  %v3151_v46 = vpop.f32.mrb[13].mxu0 }
 0xf4b   : > { %v2121_v47 = vadd.f32 %v2120_v45, %v3541_v38 }
 0xf4c   : > { %v2283_v48 = vpop.f32.mrb[14].mxu0 }
 0xf4d   : > { %v2287_v49 = vmul.f32 0.35355338, %v2283_v48  ;;  %v3161_v50 = vpop.f32.mrb[15].mxu0  ;;  %v2122_v51 = vsel %vm619_vm2, %v2121_v47, -inf }
 0xf4e   : > { %2123 = vmax.xlane.f32.xlu0 %v2122_v51  ;;  %v2914_v51 = vld [vmem:[%s3915_s6 + $0x1] ss:$0 sm:$0xff] }
 0xf4f   : > { %v2288_v52 = vadd.f32 %v2287_v49, %v3541_v38 }
 0xf51   : > { %v2289_v53 = vsel %vm619_vm2, %v2288_v52, -inf }
 0xf52   : > { %2290 = vmax.xlane.f32.xlu0 %v2289_v53 }
 0xf57   : > { %1799 = vrot.lane.b32.xlu1 %v3720_v23, %s3936_s24  ;;  %s3941_s24 = smov 16  }
 0xfd3   : > { %v1790_v54 = vpop.xlane.xlu1 %1789 }
 0xfd4   : > { %v1791_v55 = vsub.f32 %v1787_v31, %v1790_v54  ;;  %v1957_v56 = vpop.xlane.xlu0 %1956 }
 0xfd5   : > { %v1958_v57 = vsub.f32 %v1954_v41, %v1957_v56 }
 0xfd6   : > { %v1792_v58 = vmul.f32 1.442695, %v1791_v55 }
 0xfd7   : > { %v1959_v59 = vmul.f32 1.442695, %v1958_v57  ;;  %v1800_v60 = vpop.permute.xlu1 %1799 }
 0xfd8   : > { %3334 = vpow2.f32 %v1792_v58  ;;  %3133 = vmatpush3.msra.mxu1 %v1800_v60 }
 0xfd9   : > { %3336 = vpow2.f32 %v1959_v59  ;;  %3142 = vmatprep.subr.mxu1 %v3370_v13 }
 0xfdb   : > { %v2124_v61 = vpop.xlane.xlu0 %2123 }
 0xfdc   : > { %v2125_v38 = vsub.f32 %v2121_v47, %v2124_v61 }
 0xfde   : > { %v2126_v62 = vmul.f32 1.442695, %v2125_v38  ;;  %v2917_v38 = vld [vmem:[%s3917_s8 + $0x20] sm:$0xff] }
 0xfdf   : > { %v2291_v63 = vpop.xlane.xlu0 %2290 }
 0xfe0   : > { %3338 = vpow2.f32 %v2126_v62  ;;  %v2292_v1 = vsub.f32 %v2288_v52, %v2291_v63  ;;  %v2918_v62 = vld [vmem:[%s3917_s8 + $0x28] sm:$0xff] }
 0xfe1   : > { %v3262_v63 = vpack.c.bf16 %v2918_v62, %v2917_v38  ;;  %v2935_v38 = vld [vmem:[%s3921_s12 + $0x2] sm:$0x3] }
 0xfe2   : > { %v3335_v2 = vpop.eup %3334  ;;  %v2293_v3 = vmul.f32 1.442695, %v2292_v1  ;;  %v2920_v1 = vld [vmem:[%s3917_s8 + $0x38] sm:$0xff]  ;;  %v2707_v62 = vrot.slane %v2935_v38, %v3501_v20 }
 0xfe3   : > { %v3337_v0 = vpop.eup %3336  ;;  %v1794_v4 = vsel %vm619_vm2, %v3335_v2, 0.0 }
 0xfe4   : > { %3340 = vpow2.f32 %v2293_v3  ;;  %1795 = vadd.xlane.f32.xlu1 %v1794_v4  ;;  %v1961_v5 = vsel %vm619_vm2, %v3337_v0, 0.0 }
 0xfe5   : > { %1962 = vadd.xlane.f32.xlu0 %v1961_v5  ;;  %v2916_v5 = vld [vmem:[%s3916_s7 + $0x2] sm:$0x3] }
 0xfea   : > { %v3339_v6 = vpop.eup %3338 }
 0xfeb   : > { %v2128_v7 = vsel %vm619_vm2, %v3339_v6, 0.0 }
 0xfec   : > { %2129 = vadd.xlane.f32.xlu1 %v2128_v7 }
 0xfee   : > { %v3341_v8 = vpop.eup %3340 }
 0xfef   : > { %v2295_v9 = vsel %vm619_vm2, %v3341_v8, 0.0 }
 0xff0   : > { %2296 = vadd.xlane.f32.xlu0 %v2295_v9  ;;  %v2501_v9 = vrot.slane %v2916_v5, %v3506_v22 }
 0xffd   : > { %2133 = vrot.lane.b32.xlu1 %v3720_v23, %s3937_s25  ;;  %s3942_s25 = smov 24  }
0x1001   : > { %2300 = vrot.lane.b32.xlu1 %v3720_v23, %s3938_s26 }
0x1006   : > { %1966 = vrot.lane.b32.xlu0 %v3720_v23, %s3939_s30 }
0x1071   : > { %v1796_v11 = vpop.xlane.xlu1 %1795 }
0x1072   : > { %3342 = vrcp.f32 %v1796_v11  ;;  %v1963_v12 = vpop.xlane.xlu0 %1962 }
0x1073   : > { %3344 = vrcp.f32 %v1963_v12 }
0x1079   : > { %v2130_v28 = vpop.xlane.xlu1 %2129 }
0x107a   : > { %3346 = vrcp.f32 %v2130_v28  ;;  %v2924_v28 = vld [vmem:[%s3919_s10 + $0x40] sm:$0xff] }
0x107c   : > { %v3343_v14 = vpop.eup %3342 }
0x107d   : > { %v1798_v15 = vmul.f32 %v3343_v14, %v3335_v2  ;;  %v2297_v16 = vpop.xlane.xlu0 %2296  ;;  %v3345_v17 = vpop.eup %3344  ;;  %v2925_v14 = vld [vmem:[%s3919_s10 + $0x48] sm:$0xff] }
0x107e   : > { %3348 = vrcp.f32 %v2297_v16  ;;  %v1965_v19 = vmul.f32 %v3345_v17, %v3337_v0  ;;  %v2134_v21 = vpop.permute.xlu1 %2133  ;;  %v2926_v16 = vld [vmem:[%s3919_s10 + $0x50] sm:$0xff] }
0x107f   : > { %3135 = vmatmul.mubr.msk.f32.vlgmr.msra.gmra.mrb[18].mxu1 %vm619_vm2, %v1798_v15  ;;  %v3268_v15 = vpack.c.bf16 %v2925_v14, %v2924_v28 }
0x1080   : > { %3144 = vmatprep.mubr.msk.f32.mxu1 %vm3369_vm1, %v3370_v13 }
0x1081   : > { %v1967_v24 = vpop.permute.xlu0 %1966 }
0x1082   : > { %3143 = vmatpush3.msra.mxu1 %v1967_v24  ;;  %v2301_v26 = vpop.permute.xlu1 %2300 }
0x1083   : > { %3145 = vmatmul.mubr.msk.f32.vlgmr.msra.gmra.mrb[20].mxu1 %vm619_vm2, %v1965_v19  ;;  %3152 = vmatprep.subr.mxu1 %v3370_v13  ;;  %v2928_v19 = vld [vmem:[%s3919_s10 + $0x60] sm:$0xff] }
0x1084   : > { %v3347_v23 = vpop.eup %3346  ;;  %3153 = vmatpush3.msra.mxu1 %v2134_v21  ;;  %3154 = vmatprep.mubr.msk.f32.mxu1 %vm3369_vm1, %v3370_v13  ;;  %v2929_v21 = vld [vmem:[%s3919_s10 + $0x68] sm:$0xff] }
0x1085   : > { %v2132_v25 = vmul.f32 %v3347_v23, %v3339_v6  ;;  %3162 = vmatprep.subr.mxu1 %v3370_v13  ;;  %v2496_v6 = vrot.slane %v2916_v5, %v3501_v20  ;;  %v3274_v24 = vpack.c.bf16 %v2929_v21, %v2928_v19  ;;  %v2930_v23 = vld [vmem:[%s3919_s10 + $0x70] sm:$0xff] }
0x1087   : > { %3155 = vmatmul.mubr.msk.f32.vlgmr.msra.gmra.mrb[22].mxu1 %vm619_vm2, %v2132_v25  ;;  %v2931_v25 = vld [vmem:[%s3919_s10 + $0x78] sm:$0xff] }
0x1088   : > { %v3349_v27 = vpop.eup %3348  ;;  %3163 = vmatpush3.msra.mxu1 %v2301_v26  ;;  %3164 = vmatprep.mubr.msk.f32.mxu1 %vm3369_vm1, %v3370_v13  ;;  %v3277_v26 = vpack.c.bf16 %v2931_v25, %v2930_v23 }
0x1089   : > { %v2299_v29 = vmul.f32 %v3349_v27, %v3341_v8  ;;  %3261 = vmatprep.subr.bf16.mxu1 %v3368_v10  ;;  %v2922_v27 = vld [vmem:[%s3918_s9 + $0x1] ss:$0 sm:$0xff] }
0x108b   : > { %3165 = vmatmul.mubr.msk.f32.vlgmr.msra.gmra.mrb[24].mxu1 %vm619_vm2, %v2299_v29 }
0x108c   : > { %3186 = vmatprep.mubr.msk.f32.mxu1 %vm3369_vm1, %v3370_v13  ;;  %3263 = vmatpush3.bf16.msra.mxu1 %v3262_v63 }
0x108d   : > { %3264 = vmatprep.subr.bf16.mxu1 %v3368_v10 }
0x1152   : > { %v1871_v37 = vpop.f32.mrb[18].mxu1 }
0x1153   : > { %v3136_v39 = vpop.f32.mrb[19].mxu1 }
0x1156   : > { %v2038_v40 = vpop.f32.mrb[20].mxu1 }
0x1157   : > { %2377 = vrot.lane.b32.xlu1 %v2038_v40, %s3940_s22  ;;  %v3146_v31 = vpop.f32.mrb[21].mxu1 }
0x115a   : > { %v2205_v41 = vpop.f32.mrb[22].mxu1 }
0x115b   : > { %2381 = vrot.lane.b32.xlu0 %v2205_v41, %s3941_s24  ;;  %v3156_v42 = vpop.f32.mrb[23].mxu1 }
0x115c   : > { %v2933_v42 = vld [vmem:[%s3920_s11 + $0x1] ss:$0 sm:$0xff] }
0x115e   : > { %v2372_v43 = vpop.f32.mrb[24].mxu1 }
0x115f   : > { %2385 = vrot.lane.b32.xlu1 %v2372_v43, %s3942_s25  ;;  %v3166_v44 = vpop.f32.mrb[25].mxu1 }
0x11c9   : > { %v2378_v45 = vpop.permute.xlu1 %2377 }
0x11ca   : > { %v2388_v47 = vsel %vm619_vm2, %v1871_v37, %v2378_v45 }
0x11cd   : > { %v2382_v46 = vpop.permute.xlu0 %2381 }
0x11ce   : > { %v2389_v48 = vsel %vm1303_vm3, %v2388_v47, %v2382_v46 }
0x11d1   : > { %v2386_v49 = vpop.permute.xlu1 %2385 }
0x11d2   : > { %v2390_v50 = vsel %vm1305_vm4, %v2389_v48, %v2386_v49 }
0x11d3   : > { %3176 = vmatmul.mubr.msk.f32.vlgmr.msra.gmra.mrb[16].mxu0 %vm504_vm0, %v2390_v50 }
0x11d4   : > { %3205 = vmatprep.mubr.msk.f32.mxu0 %vm3369_vm1, %v3370_v13  ;;  %3269 = vmatpush3.bf16.msra.mxu0 %v3268_v15 }
0x11d5   : > { %3270 = vmatprep.subr.bf16.mxu0 %v3368_v10 }
0x12a6   : > { %v2473_v52 = vpop.f32.mrb[16].mxu0 }
0x12a7   : > { %v2474_v53 = vadd.f32 %v2914_v51, %v2473_v52  ;;  %v3177_v54 = vpop.f32.mrb[17].mxu0 }
0x12a8   : > { %v2715_v54 = vld [vmem:[%s3922_s13 + $0x8] sm:$0xff] }
0x12a9   : > { %v2477_v55 = vadd.f32 %v2474_v53, %v3711_v18  ;;  %v2919_v18 = vld [vmem:[%s3917_s8 + $0x30] sm:$0xff]  ;;  %v2714_v53 = vld [vmem:[%s3922_s13] sm:$0xff] }
0x12aa   : > { %v3265_v2 = vpack.c.bf16 %v2920_v1, %v2919_v18  ;;  %v2712_v1 = vrot.slane %v2935_v38, %v3506_v22 }
0x12ab   : > { %v2480_v56 = vsel %vm504_vm0, %v2477_v55, 0.0 }
0x12ac   : > { %2481 = vadd.xlane.f32.xlu0 %v2480_v56  ;;  %3266 = vmatpush3.bf16.msra.mxu1 %v3265_v2  ;;  %v2716_v56 = vld [vmem:[%s3922_s13 + $0x10] sm:$0xff] }
0x12ad   : > { %3279 = vmatprep.subr.bf16.mxu1 %v3368_v10 }
0x1339   : > { %v2482_v57 = vpop.xlane.xlu0 %2481 }
0x133a   : > { %v2483_v58 = vmul.f32 0.03125, %v2482_v57  ;;  %v2717_v57 = vld [vmem:[%s3922_s13 + $0x18] sm:$0xff] }
0x133c   : > { %v2484_v59 = vsub.f32 %v2477_v55, %v2483_v58  ;;  %v3280_v55 = vpack.c.bf16 %v2715_v54, %v2714_v53  ;;  %v3283_v58 = vpack.c.bf16 %v2717_v57, %v2716_v56 }
0x133e   : > { %v2485_v60 = vmul.f32 %v2484_v59, %v2484_v59 }
0x1340   : > { %v2486_v61 = vsel %vm504_vm0, %v2485_v60, 0.0 }
0x1341   : > { %2487 = vadd.xlane.f32.xlu1 %v2486_v61 }
0x13ce   : > { %v2488_v3 = vpop.xlane.xlu1 %2487 }
0x13cf   : > { %v2489_v0 = vmul.f32 0.03125, %v2488_v3 }
0x13d1   : > { %v2490_v4 = vadd.f32 1e-12, %v2489_v0 }
0x13d3   : > { %3350 = vrsqrt.f32 %v2490_v4 }
0x13dd   : > { %v3351_v7 = vpop.eup %3350 }
0x13de   : > { %v2492_v8 = vmul.f32 %v3351_v7, %v2484_v59 }
0x13e0   : > { %v2497_v11 = vmul.f32 %v2496_v6, %v2492_v8 }
0x13e2   : > { %v2502_v12 = vadd.f32 %v2501_v9, %v2497_v11 }
0x13e4   : > { %3187 = vmatmul.mubr.msk.f32.vlgmr.msra.gmra.mrb[26].mxu1 %vm504_vm0, %v2502_v12 }
0x13e5   : > { %3216 = vmatprep.mubr.msk.f32.mxu1 %vm3369_vm1, %v3370_v13  ;;  %v2927_v13 = vld [vmem:[%s3919_s10 + $0x58] sm:$0xff]  ;;  %3281 = vmatpush3.bf16.msra.mxu1 %v3280_v55 }
0x13e6   : > { %v3271_v17 = vpack.c.bf16 %v2927_v13, %v2926_v16  ;;  %3282 = vmatprep.subr.bf16.mxu1 %v3368_v10 }
0x13e8   : > { %3272 = vmatpush3.bf16.msra.mxu0 %v3271_v17 }
0x13e9   : > { %3273 = vmatprep.subr.bf16.mxu0 %v3368_v10  ;;  %3284 = vmatpush3.bf16.msra.mxu1 %v3283_v58 }
0x13ec   : > { %3275 = vmatpush3.bf16.msra.mxu0 %v3274_v24 }
0x13ed   : > { %3276 = vmatprep.subr.bf16.mxu0 %v3368_v10  ;;  %v2718_v10 = vld [vmem:[%s3923_s14] sm:$0x1] }
0x13f0   : > { %3278 = vmatpush3.bf16.msra.mxu0 %v3277_v26 }
0x14b7   : > { %v2585_v29 = vpop.f32.mrb[26].mxu1 }
0x14b8   : > { %v2586_v30 = vadd.f32 %v2922_v27, %v2585_v29  ;;  %v3188_v32 = vpop.f32.mrb[27].mxu1 }
0x14ba   : > { %v2589_v33 = vmul.f32 %v2586_v30, %v2586_v30 }
0x14bc   : > { %v2590_v34 = vmul.f32 %v2589_v33, %v2586_v30 }
0x14be   : > { %v2591_v35 = vmul.f32 0.044715, %v2590_v34 }
0x14c0   : > { %v2592_v36 = vadd.f32 %v2591_v35, %v2586_v30 }
0x14c2   : > { %v2593_v37 = vmul.f32 0.7978846, %v2592_v36 }
0x14c4   : > { %3352 = vtanh.f32 %v2593_v37 }
0x14ce   : > { %v3353_v39 = vpop.eup %3352 }
0x14cf   : > { %v2595_v40 = vadd.f32 1.0, %v3353_v39 }
0x14d1   : > { %v2596_v31 = vmul.f32 0.5, %v2595_v40 }
0x14d3   : > { %v2597_v41 = vmul.f32 %v2596_v31, %v2586_v30 }
0x14d5   : > { %3206 = vmatmul.mubr.msk.f32.vlgmr.msra.gmra.mrb[18].mxu0 %vm1524_vm5, %v2597_v41 }
0x15a8   : > { %v2684_v43 = vpop.f32.mrb[18].mxu0 }
0x15a9   : > { %v2685_v44 = vadd.f32 %v2933_v42, %v2684_v43  ;;  %v3207_v45 = vpop.f32.mrb[19].mxu0 }
0x15ab   : > { %v2688_v46 = vadd.f32 %v2685_v44, %v2502_v12 }
0x15ad   : > { %v2691_v47 = vsel %vm504_vm0, %v2688_v46, 0.0 }
0x15ae   : > { %2692 = vadd.xlane.f32.xlu0 %v2691_v47 }
0x163b   : > { %v2693_v48 = vpop.xlane.xlu0 %2692 }
0x163c   : > { %v2694_v49 = vmul.f32 0.03125, %v2693_v48 }
0x163e   : > { %v2695_v50 = vsub.f32 %v2688_v46, %v2694_v49 }
0x1640   : > { %v2696_v51 = vmul.f32 %v2695_v50, %v2695_v50 }
0x1642   : > { %v2697_v52 = vsel %vm504_vm0, %v2696_v51, 0.0 }
0x1643   : > { %2698 = vadd.xlane.f32.xlu0 %v2697_v52 }
0x16d0   : > { %v2699_v59 = vpop.xlane.xlu0 %2698 }
0x16d1   : > { %v2700_v60 = vmul.f32 0.03125, %v2699_v59 }
0x16d3   : > { %v2701_v61 = vadd.f32 1e-12, %v2700_v60 }
0x16d5   : > { %3354 = vrsqrt.f32 %v2701_v61 }
0x16df   : > { %v3355_v63 = vpop.eup %3354 }
0x16e0   : > { %v2703_v18 = vmul.f32 %v3355_v63, %v2695_v50 }
0x16e2   : > { %v2708_v2 = vmul.f32 %v2707_v62, %v2703_v18 }
0x16e4   : > { %v2713_v3 = vadd.f32 %v2712_v1, %v2708_v2 }
0x16e6   : > { %3217 = vmatmul.mubr.msk.f32.vlgmr.msra.gmra.mrb[28].mxu1 %vm504_vm0, %v2713_v3 }
0x17b9   : > { %v2788_v0 = vpop.f32.mrb[28].mxu1 }
0x17ba   : > { %v2789_v4 = vadd.f32 %v2788_v0, %v2718_v10  ;;  %v3218_v5 = vpop.f32.mrb[29].mxu1 }
0x17bc   : > { %v2792_v6 = vmul.f32 %v2789_v4, %v2789_v4 }
0x17be   : > { %v2794_v7 = vsel %vm2793_vm6, %v2792_v6, 0.0 }
0x17bf   : > { %2795 = vadd.xlane.f32.xlu0 %v2794_v7 }
0x184c   : > { %v2796_v20 = vpop.xlane.xlu0 %2795 }
0x184d   : > { %3356 = vrsqrt.f32 %v2796_v20  ;;  %vm2799_vm7 = vcmp.eq.f32.partialorder %v2796_v20, inf  ;;  %v2802_v9 = vand.u32 2147483648, %v2796_v20  ;;  %vm2801_vm8 = vcmp.eq.f32.partialorder %v2796_v20, 0.0 }
0x1857   : > { %v3357_v8 = vpop.eup %3356 }
0x1858   : > { %v2798_v22 = vmul.f32 %v3357_v8, %v2796_v20 }
0x185a   : > { %v2800_v11 = vsel %vm2799_vm7, %v2796_v20, %v2798_v22 }
0x185b   : > { %v2803_v12 = vsel %vm2801_vm8, %v2802_v9, %v2800_v11 }
0x185c   : > { %v2804_v28 = vmax.f32 %v2803_v12, 1e-12 }
0x185e   : > { %3358 = vrcp.f32 %v2804_v28 }
0x1868   : > { %v3359_v14 = vpop.eup %3358 }
0x1869   : > { %v2806_v15 = vmul.f32 %v3359_v14, %v2789_v4 }
0x186b   : > { %2807 = vst [vmem:[%s501_s21] sm:$0x1] %v2806_v15 }
0x186c PF: > { %s25_s18 = sadd.s32 1, %s3366_s18  }
0x186d   : > { %p22_p4 = scmp.ge.s32.totalorder %s25_s18, 6  }
0x186f   :  { %24 = sbr.rel (!%p22_p4) target bundleno = 1 (0x1), region = 123 }

</bundles_post_ra>
